<compile_context>
chip_gen: v7x
topology: tpu7x:2x2x1
jax: 0.10.0
libtpu: 0.0.40
codegen_flags: <defaults>
</compile_context>

<pallas_src>
import functools

import jax
import jax.numpy as jnp
from jax import lax
from jax.experimental import pallas as pl
from jax.experimental.pallas import tpu as pltpu

_LANES = 128          # lane width / per-gate padding stride
_SUBLANES = 8         # f32 sublane granularity
_DEFAULT_MAX_BB = 64  # default batch-block cap (vreg-pressure sweet spot; sweep 64-128)


def _round_up(x, m):
    return ((x + m - 1) // m) * m


def _bilstm_fc_kernel(x_ref, win_ref, b_ref, whh_ref, fcw_ref, fcb_ref,
                      out_ref, xg_ref):
    """Fused bidirectional LSTM recurrence + final Linear for one batch block.

    x_ref   : (T, BB, E)    time-major embedded inputs (compute dtype)
    win_ref : (E, 2*4G)     [forward | reverse] input->gate weights (compute dtype)
    b_ref   : (1, 4G)       combined fwd+rev gate bias (f32)
    whh_ref : (G, 4G)       block-diagonal fused fwd/rev recurrent weights
    fcw_ref : (G, CP)       final Linear weight (padded)
    fcb_ref : (1, CP)       final Linear bias (padded, f32)
    out_ref : (BB, CP)      lane-dense logits slab
    xg_ref  : (T*BB, 4G)    f32 scratch: precombined gate pre-activations
    """
    T, BB, E = x_ref.shape
    G4 = b_ref.shape[-1]
    G = G4 // 4
    cdtype = whh_ref.dtype

    # ---- Prologue (off the serial chain) -----------------------------------
    # One fused input-projection MXU matmul for BOTH directions, then combine
    # fwd[t] + rev[T-1-t] + bias once so the recurrence does a single aligned
    # scratch load per step.
    x2 = x_ref[...].reshape(T * BB, E)
    proj = jnp.dot(x2, win_ref[...], preferred_element_type=jnp.float32)  # (T*BB, 2*4G)
    bias = b_ref[...]
    for t in range(T):  # static T -> static, aligned slices
        xg_ref[t * BB:(t + 1) * BB, :] = (
            proj[t * BB:(t + 1) * BB, :G4]
            + proj[(T - 1 - t) * BB:(T - t) * BB, G4:]
            + bias)

    whh = whh_ref[...]

    # ---- Fused bidirectional recurrence: only h @ W_hh on the chain. --------
    # Hidden/cell lanes: [0:H] forward, [H:2H] reverse, [2H:G] exact zeros.
    def step(t, carry):
        h, c = carry
        row = pl.multiple_of(t * BB, BB)
        gates = xg_ref[pl.ds(row, BB), :] + jnp.dot(
            h.astype(cdtype), whh, preferred_element_type=jnp.float32)
        # Vreg-aligned 128-lane gate slices (PyTorch gate order i, f, g, o).
        i = jax.nn.sigmoid(gates[:, 0 * G:1 * G])
        f = jax.nn.sigmoid(gates[:, 1 * G:2 * G])
        g = jnp.tanh(gates[:, 2 * G:3 * G])
        o = jax.nn.sigmoid(gates[:, 3 * G:4 * G])
        c_new = f * c + i * g
        h_new = o * jnp.tanh(c_new)
        return h_new, c_new
    # TODO(synk): when H < 64 and the recurrence becomes MXU/EUP-bound at large
    # BB, pack two gates per 128-lane block (halves whh width and EUP work).

    h0 = jnp.zeros((BB, G), jnp.float32)
    c0 = jnp.zeros((BB, G), jnp.float32)
    h, _ = lax.fori_loop(0, T, step, (h0, c0),
                         unroll=True if T <= 16 else 8)

    # h lanes [0:H] = final forward hidden, [H:2H] = reverse hidden at pos 0.
    # Dropout is identity at inference; fused Linear -> lane-dense logits slab.
    out_ref[...] = (jnp.dot(h.astype(cdtype), fcw_ref[...],
                            preferred_element_type=jnp.float32) + fcb_ref[...])


def pack_params(params, hidden_dim, compute_dtype=jnp.float32):
    """Repack PyTorch-layout LSTM/FC weights into the kernel's padded layout.

    Gate stride G >= 2H (multiple of 128). Within each of the 4 gate blocks
    (i, f, g, o): lanes [0:H] forward direction, [H:2H] reverse direction,
    [2H:G] zero padding (zero weights + zero bias keep padded hidden/cell lanes
    exactly zero through the recurrence). Matmul operands are cast to
    `compute_dtype` (e.g. bf16 for 2x MXU throughput); biases stay f32.
    """
    H = hidden_dim
    E = params["embedding"].shape[1]
    C = params["fc_w"].shape[0]
    G = _round_up(2 * H, _LANES)
    G4 = 4 * G
    CP = _round_up(C, _LANES)

    def pack_in(w_ih, off):                       # (4H, E) -> (E, 4G)
        w = jnp.zeros((E, G4), jnp.float32)
        for k in range(4):
            w = w.at[:, k * G + off:k * G + off + H].set(
                w_ih[k * H:(k + 1) * H, :].T)
        return w

    def pack_hh(w_hh, off):                       # (4H, H) -> (G, 4G)
        w = jnp.zeros((G, G4), jnp.float32)
        for k in range(4):
            w = w.at[off:off + H, k * G + off:k * G + off + H].set(
                w_hh[k * H:(k + 1) * H, :].T)
        return w

    def pack_b(b_ih, b_hh, off):                  # (4H,) + (4H,) -> (1, 4G)
        b = jnp.zeros((1, G4), jnp.float32)
        for k in range(4):
            b = b.at[0, k * G + off:k * G + off + H].set(
                b_ih[k * H:(k + 1) * H] + b_hh[k * H:(k + 1) * H])
        return b

    win = jnp.concatenate(
        [pack_in(params["w_ih_f"], 0), pack_in(params["w_ih_r"], H)], axis=1)
    whh = pack_hh(params["w_hh_f"], 0) + pack_hh(params["w_hh_r"], H)
    b = (pack_b(params["b_ih_f"], params["b_hh_f"], 0)
         + pack_b(params["b_ih_r"], params["b_hh_r"], H))
    fcw = jnp.zeros((G, CP), jnp.float32).at[:2 * H, :C].set(params["fc_w"].T)
    fcb = jnp.zeros((1, CP), jnp.float32).at[0, :C].set(params["fc_b"])

    return {
        "win": win.astype(compute_dtype),
        "b": b,
        "whh": whh.astype(compute_dtype),
        "fcw": fcw.astype(compute_dtype),
        "fcb": fcb,
    }


def _vmem_bytes_estimate(T, BB, E, G, G4, CP, cbytes):
    x_blk = T * BB * E * cbytes * 2                                  # double-buffered
    weights = (E * 2 * G4 + G * G4 + G * CP) * cbytes * 2 + (G4 + CP) * 4 * 2
    scratch = T * BB * G4 * 4
    out_blk = BB * CP * 4 * 2
    return x_blk + weights + scratch + out_blk


def bilstm_forward(tokens, params, hidden_dim, *, batch_block=None,
                   compute_dtype=jnp.float32):
    """tokens: (B, T) int32. Returns (preds (B,) int32, logits (B, C) f32)."""
    H = hidden_dim
    C = params["fc_w"].shape[0]
    kp = pack_params(params, H, compute_dtype)

    B, T = tokens.shape
    if batch_block is None:
        # Fill MXU rows when batch allows (128-row MXU on v5e, 256 on v6e/v7x);
        # the default cap keeps gate-tensor vreg pressure in check, and keeping
        # ceil(B/BB) >= 2 when B permits lets v7x shard across both TCs.
        batch_block = min(_DEFAULT_MAX_BB, _round_up(B, _SUBLANES))
    BB = _round_up(batch_block, _SUBLANES)
    n_b = pl.cdiv(B, BB)
    B_pad = n_b * BB

    # Embedding gather directly time-major (glue; hot path is the kernel).
    # TODO(synk): fuse this gather into the kernel prologue (VMEM-resident
    # table + SMEM token ids) to avoid materializing x through HBM at large B*T.
    x = jnp.take(params["embedding"], tokens.T, axis=0)             # (T, B, E)
    x = jnp.pad(x, ((0, 0), (0, B_pad - B), (0, 0))).astype(compute_dtype)
    E = x.shape[-1]

    G4 = kp["b"].shape[1]
    G = G4 // 4
    CP = kp["fcb"].shape[1]

    def full(shape):
        # TODO(synk): mark these grid-invariant weights single-buffered
        # (pipeline_mode=pl.Buffered(1)) to drop their redundant VMEM copy.
        return pl.BlockSpec(shape, lambda b, _nd=len(shape): (0,) * _nd)

    cbytes = jnp.dtype(compute_dtype).itemsize
    est = _vmem_bytes_estimate(T, BB, E, G, G4, CP, cbytes)
    cp_kwargs = dict(dimension_semantics=("parallel",))
    if est > 24 * 1024 * 1024:
        # Default scoped VMEM is 16 MiB on v5e / 32 MiB on v6e & v7x; raise it
        # when the whole-sequence projection scratch needs it.
        cp_kwargs["vmem_limit_bytes"] = int(min(est * 3 // 2 + (4 << 20), 100 << 20))
    # TODO(synk): for long sequences (esp. v7x, 64 MiB VMEM) stream x over a
    # T-chunk grid axis with scratch-carried h/c instead of whole-sequence scratch.

    logits_pad = pl.pallas_call(
        _bilstm_fc_kernel,
        grid=(n_b,),
        in_specs=[
            pl.BlockSpec((T, BB, E), lambda b: (0, b, 0)),
            full(kp["win"].shape),
            full(kp["b"].shape),
            full(kp["whh"].shape),
            full(kp["fcw"].shape),
            full(kp["fcb"].shape),
        ],
        out_specs=pl.BlockSpec((BB, CP), lambda b: (b, 0)),
        out_shape=jax.ShapeDtypeStruct((B_pad, CP), jnp.float32),
        scratch_shapes=[
            pltpu.VMEM((T * BB, G4), jnp.float32),   # combined gate pre-activations
        ],
        compiler_params=pltpu.CompilerParams(**cp_kwargs),
    )(x, kp["win"], kp["b"], kp["whh"], kp["fcw"], kp["fcb"])

    logits = logits_pad[:B, :C]
    preds = jnp.argmax(logits, axis=1)   # module returns argmax when trainable=False
    return preds, logits


def init_params(key, vocab_size, embedding_dim, hidden_dim, num_class, padding_idx=1):
    """Parameters in PyTorch nn.LSTM / nn.Linear layout."""
    ks = jax.random.split(key, 12)
    bound = 1.0 / float(hidden_dim) ** 0.5

    def u(k, shape):
        return jax.random.uniform(k, shape, jnp.float32, -bound, bound)

    emb = jax.random.normal(ks[0], (vocab_size, embedding_dim), jnp.float32)
    emb = emb.at[padding_idx].set(0.0)   # padding_idx row zeroed, as in nn.Embedding

    H, E, C = hidden_dim, embedding_dim, num_class
    return {
        "embedding": emb,
        "w_ih_f": u(ks[1], (4 * H, E)),
        "w_hh_f": u(ks[2], (4 * H, H)),
        "b_ih_f": u(ks[3], (4 * H,)),
        "b_hh_f": u(ks[4], (4 * H,)),
        "w_ih_r": u(ks[5], (4 * H, E)),
        "w_hh_r": u(ks[6], (4 * H, H)),
        "b_ih_r": u(ks[7], (4 * H,)),
        "b_hh_r": u(ks[8], (4 * H,)),
        "fc_w": u(ks[9], (C, 2 * H)),
        "fc_b": u(ks[10], (C,)),
    }


def _reference_forward(tokens, params, hidden_dim):
    """Pure-JAX reference of the same math (PyTorch-layout weights)."""
    H = hidden_dim
    x = jnp.take(params["embedding"], tokens, axis=0).astype(jnp.float32)  # (B,T,E)
    B, T, E = x.shape

    def cell(x_t, h, c, w_ih, w_hh, b_ih, b_hh):
        gates = x_t @ w_ih.T + h @ w_hh.T + b_ih + b_hh
        i = jax.nn.sigmoid(gates[:, :H])
        f = jax.nn.sigmoid(gates[:, H:2 * H])
        g = jnp.tanh(gates[:, 2 * H:3 * H])
        o = jax.nn.sigmoid(gates[:, 3 * H:])
        c = f * c + i * g
        return o * jnp.tanh(c), c

    h_f = c_f = h_r = c_r = jnp.zeros((B, H), jnp.float32)
    for t in range(T):
        h_f, c_f = cell(x[:, t], h_f, c_f, params["w_ih_f"], params["w_hh_f"],
                        params["b_ih_f"], params["b_hh_f"])
        h_r, c_r = cell(x[:, T - 1 - t], h_r, c_r, params["w_ih_r"], params["w_hh_r"],
                        params["b_ih_r"], params["b_hh_r"])
    feats = jnp.concatenate([h_f, h_r], axis=1)
    logits = feats @ params["fc_w"].T + params["fc_b"]
    return jnp.argmax(logits, axis=1), logits


if __name__ == "__main__":
    # Small shapes consistent with the module: vocab=100, emb=32, hidden=32,
    # num_class=4, batch=2, seq=8.
    VOCAB, EMB, HID, NCLS = 100, 32, 32, 4
    B, T = 2, 8

    root = jax.random.PRNGKey(0)
    k_params, k_tok, k_tok2 = jax.random.split(root, 3)
    params = init_params(k_params, VOCAB, EMB, HID, NCLS, padding_idx=1)
    tokens = jax.random.randint(k_tok, (B, T), 0, VOCAB, dtype=jnp.int32)

    # f32 path at the module's native (tiny) shape.
    preds, logits = jax.jit(
        functools.partial(bilstm_forward, hidden_dim=HID))(tokens, params)
    jax.block_until_ready(preds)
    ref_preds, ref_logits = _reference_forward(tokens, params, HID)
    assert jnp.allclose(logits, ref_logits, rtol=1e-4, atol=1e-4), "logits mismatch"
    assert jnp.array_equal(preds, ref_preds), "argmax mismatch"

    # bf16 matmul-operand path (f32 accumulation / gate math), looser tolerance.
    preds_bf, logits_bf = jax.jit(functools.partial(
        bilstm_forward, hidden_dim=HID, compute_dtype=jnp.bfloat16))(tokens, params)
    jax.block_until_ready(preds_bf)
    assert jnp.allclose(logits_bf, ref_logits, rtol=5e-2, atol=5e-2), \
        "bf16 logits mismatch"

    # Larger batch: exercises multi-block grid, batch padding and bigger BB.
    B2 = 80
    tokens2 = jax.random.randint(k_tok2, (B2, T), 0, VOCAB, dtype=jnp.int32)
    preds2, logits2 = jax.jit(
        functools.partial(bilstm_forward, hidden_dim=HID))(tokens2, params)
    jax.block_until_ready(preds2)
    ref_preds2, ref_logits2 = _reference_forward(tokens2, params, HID)
    assert jnp.allclose(logits2, ref_logits2, rtol=1e-4, atol=1e-4), \
        "batched logits mismatch"

    # TODO(synk): pack_padded_sequence variable-length handling not modeled;
    # the default inference path implies full-length sequences (lengths == T).
    print("KERNEL_OK")
</pallas_src>

<mosaic_0001>
module attributes {stable_mosaic.version = 11 : i64} {
  func.func @_bilstm_fc_kernel(%arg0: i32, %arg1: memref<8x8x32xf32, #tpu.memory_space<vmem>>, %arg2: memref<32x1024xf32, #tpu.memory_space<vmem>>, %arg3: memref<1x512xf32, #tpu.memory_space<vmem>>, %arg4: memref<128x512xf32, #tpu.memory_space<vmem>>, %arg5: memref<128x128xf32, #tpu.memory_space<vmem>>, %arg6: memref<1x128xf32, #tpu.memory_space<vmem>>, %arg7: memref<8x128xf32, #tpu.memory_space<vmem>>, %arg8: memref<64x512xf32, #tpu.memory_space<vmem>>) attributes {dimension_semantics = [#tpu.dimension_semantics<parallel>], iteration_bounds = array<i64: 1>, scalar_prefetch = 0 : i64, scratch_operands = 1 : i64, tpu.core_type = #tpu.core_type<tc>, window_params = [{transform_indices = @transform_0, window_bounds = array<i64: 8, 8, 32>}, {pipeline_mode = #tpu.pipeline_mode<synchronous>, transform_indices = @transform_1, window_bounds = array<i64: 32, 1024>}, {pipeline_mode = #tpu.pipeline_mode<synchronous>, transform_indices = @transform_2, window_bounds = array<i64: 1, 512>}, {pipeline_mode = #tpu.pipeline_mode<synchronous>, transform_indices = @transform_3, window_bounds = array<i64: 128, 512>}, {pipeline_mode = #tpu.pipeline_mode<synchronous>, transform_indices = @transform_4, window_bounds = array<i64: 128, 128>}, {pipeline_mode = #tpu.pipeline_mode<synchronous>, transform_indices = @transform_5, window_bounds = array<i64: 1, 128>}, {transform_indices = @transform_6, window_bounds = array<i64: 8, 128>}]} {
    %c0 = arith.constant 0 : index
    %c0_0 = arith.constant 0 : index
    %c0_1 = arith.constant 0 : index
    %0 = vector.load %arg1[%c0, %c0_0, %c0_1] : memref<8x8x32xf32, #tpu.memory_space<vmem>>, vector<8x8x32xf32>
    %1 = vector.shape_cast %0 : vector<8x8x32xf32> to vector<64x32xf32>
    %c0_2 = arith.constant 0 : index
    %c0_3 = arith.constant 0 : index
    %2 = vector.load %arg2[%c0_2, %c0_3] : memref<32x1024xf32, #tpu.memory_space<vmem>>, vector<32x1024xf32>
    %cst = arith.constant dense<0.000000e+00> : vector<64x1024xf32>
    %3 = tpu.matmul %1, %2, %cst {dimension_numbers = #tpu.dot_dimension_numbers<[1], [0], [0], [1], [0, 0, 1, 1], [], []>} : vector<64x32xf32>, vector<32x1024xf32>, vector<64x1024xf32> -> vector<64x1024xf32>
    %c0_4 = arith.constant 0 : index
    %c0_5 = arith.constant 0 : index
    %4 = vector.load %arg3[%c0_4, %c0_5] : memref<1x512xf32, #tpu.memory_space<vmem>>, vector<1x512xf32>
    %5 = vector.extract_strided_slice %3 {offsets = [0, 0], sizes = [8, 512], strides = [1, 1]} : vector<64x1024xf32> to vector<8x512xf32>
    %6 = vector.extract_strided_slice %3 {offsets = [56, 512], sizes = [8, 512], strides = [1, 1]} : vector<64x1024xf32> to vector<8x512xf32>
    %7 = arith.addf %5, %6 : vector<8x512xf32>
    %8 = vector.broadcast %4 : vector<1x512xf32> to vector<8x512xf32>
    %9 = arith.addf %7, %8 : vector<8x512xf32>
    %c0_6 = arith.constant 0 : index
    %c0_7 = arith.constant 0 : index
    %10 = vector.load %arg8[%c0_6, %c0_7] : memref<64x512xf32, #tpu.memory_space<vmem>>, vector<8x512xf32>
    tpu.vector_store %arg8[%c0_6, %c0_7], %9 {strides = array<i32>} : memref<64x512xf32, #tpu.memory_space<vmem>>, vector<8x512xf32>,
    %11 = vector.extract_strided_slice %3 {offsets = [8, 0], sizes = [8, 512], strides = [1, 1]} : vector<64x1024xf32> to vector<8x512xf32>
    %12 = vector.extract_strided_slice %3 {offsets = [48, 512], sizes = [8, 512], strides = [1, 1]} : vector<64x1024xf32> to vector<8x512xf32>
    %13 = arith.addf %11, %12 : vector<8x512xf32>
    %14 = vector.broadcast %4 : vector<1x512xf32> to vector<8x512xf32>
    %15 = arith.addf %13, %14 : vector<8x512xf32>
    %c8 = arith.constant 8 : index
    %c0_8 = arith.constant 0 : index
    %16 = vector.load %arg8[%c8, %c0_8] : memref<64x512xf32, #tpu.memory_space<vmem>>, vector<8x512xf32>
    tpu.vector_store %arg8[%c8, %c0_8], %15 {strides = array<i32>} : memref<64x512xf32, #tpu.memory_space<vmem>>, vector<8x512xf32>,
    %17 = vector.extract_strided_slice %3 {offsets = [16, 0], sizes = [8, 512], strides = [1, 1]} : vector<64x1024xf32> to vector<8x512xf32>
    %18 = vector.extract_strided_slice %3 {offsets = [40, 512], sizes = [8, 512], strides = [1, 1]} : vector<64x1024xf32> to vector<8x512xf32>
    %19 = arith.addf %17, %18 : vector<8x512xf32>
    %20 = vector.broadcast %4 : vector<1x512xf32> to vector<8x512xf32>
    %21 = arith.addf %19, %20 : vector<8x512xf32>
    %c16 = arith.constant 16 : index
    %c0_9 = arith.constant 0 : index
    %22 = vector.load %arg8[%c16, %c0_9] : memref<64x512xf32, #tpu.memory_space<vmem>>, vector<8x512xf32>
    tpu.vector_store %arg8[%c16, %c0_9], %21 {strides = array<i32>} : memref<64x512xf32, #tpu.memory_space<vmem>>, vector<8x512xf32>,
    %23 = vector.extract_strided_slice %3 {offsets = [24, 0], sizes = [8, 512], strides = [1, 1]} : vector<64x1024xf32> to vector<8x512xf32>
    %24 = vector.extract_strided_slice %3 {offsets = [32, 512], sizes = [8, 512], strides = [1, 1]} : vector<64x1024xf32> to vector<8x512xf32>
    %25 = arith.addf %23, %24 : vector<8x512xf32>
    %26 = vector.broadcast %4 : vector<1x512xf32> to vector<8x512xf32>
    %27 = arith.addf %25, %26 : vector<8x512xf32>
    %c24 = arith.constant 24 : index
    %c0_10 = arith.constant 0 : index
    %28 = vector.load %arg8[%c24, %c0_10] : memref<64x512xf32, #tpu.memory_space<vmem>>, vector<8x512xf32>
    tpu.vector_store %arg8[%c24, %c0_10], %27 {strides = array<i32>} : memref<64x512xf32, #tpu.memory_space<vmem>>, vector<8x512xf32>,
    %29 = vector.extract_strided_slice %3 {offsets = [32, 0], sizes = [8, 512], strides = [1, 1]} : vector<64x1024xf32> to vector<8x512xf32>
    %30 = vector.extract_strided_slice %3 {offsets = [24, 512], sizes = [8, 512], strides = [1, 1]} : vector<64x1024xf32> to vector<8x512xf32>
    %31 = arith.addf %29, %30 : vector<8x512xf32>
    %32 = vector.broadcast %4 : vector<1x512xf32> to vector<8x512xf32>
    %33 = arith.addf %31, %32 : vector<8x512xf32>
    %c32 = arith.constant 32 : index
    %c0_11 = arith.constant 0 : index
    %34 = vector.load %arg8[%c32, %c0_11] : memref<64x512xf32, #tpu.memory_space<vmem>>, vector<8x512xf32>
    tpu.vector_store %arg8[%c32, %c0_11], %33 {strides = array<i32>} : memref<64x512xf32, #tpu.memory_space<vmem>>, vector<8x512xf32>,
    %35 = vector.extract_strided_slice %3 {offsets = [40, 0], sizes = [8, 512], strides = [1, 1]} : vector<64x1024xf32> to vector<8x512xf32>
    %36 = vector.extract_strided_slice %3 {offsets = [16, 512], sizes = [8, 512], strides = [1, 1]} : vector<64x1024xf32> to vector<8x512xf32>
    %37 = arith.addf %35, %36 : vector<8x512xf32>
    %38 = vector.broadcast %4 : vector<1x512xf32> to vector<8x512xf32>
    %39 = arith.addf %37, %38 : vector<8x512xf32>
    %c40 = arith.constant 40 : index
    %c0_12 = arith.constant 0 : index
    %40 = vector.load %arg8[%c40, %c0_12] : memref<64x512xf32, #tpu.memory_space<vmem>>, vector<8x512xf32>
    tpu.vector_store %arg8[%c40, %c0_12], %39 {strides = array<i32>} : memref<64x512xf32, #tpu.memory_space<vmem>>, vector<8x512xf32>,
    %41 = vector.extract_strided_slice %3 {offsets = [48, 0], sizes = [8, 512], strides = [1, 1]} : vector<64x1024xf32> to vector<8x512xf32>
    %42 = vector.extract_strided_slice %3 {offsets = [8, 512], sizes = [8, 512], strides = [1, 1]} : vector<64x1024xf32> to vector<8x512xf32>
    %43 = arith.addf %41, %42 : vector<8x512xf32>
    %44 = vector.broadcast %4 : vector<1x512xf32> to vector<8x512xf32>
    %45 = arith.addf %43, %44 : vector<8x512xf32>
    %c48 = arith.constant 48 : index
    %c0_13 = arith.constant 0 : index
    %46 = vector.load %arg8[%c48, %c0_13] : memref<64x512xf32, #tpu.memory_space<vmem>>, vector<8x512xf32>
    tpu.vector_store %arg8[%c48, %c0_13], %45 {strides = array<i32>} : memref<64x512xf32, #tpu.memory_space<vmem>>, vector<8x512xf32>,
    %47 = vector.extract_strided_slice %3 {offsets = [56, 0], sizes = [8, 512], strides = [1, 1]} : vector<64x1024xf32> to vector<8x512xf32>
    %48 = vector.extract_strided_slice %3 {offsets = [0, 512], sizes = [8, 512], strides = [1, 1]} : vector<64x1024xf32> to vector<8x512xf32>
    %49 = arith.addf %47, %48 : vector<8x512xf32>
    %50 = vector.broadcast %4 : vector<1x512xf32> to vector<8x512xf32>
    %51 = arith.addf %49, %50 : vector<8x512xf32>
    %c56 = arith.constant 56 : index
    %c0_14 = arith.constant 0 : index
    %52 = vector.load %arg8[%c56, %c0_14] : memref<64x512xf32, #tpu.memory_space<vmem>>, vector<8x512xf32>
    tpu.vector_store %arg8[%c56, %c0_14], %51 {strides = array<i32>} : memref<64x512xf32, #tpu.memory_space<vmem>>, vector<8x512xf32>,
    %c0_15 = arith.constant 0 : index
    %c0_16 = arith.constant 0 : index
    %53 = vector.load %arg4[%c0_15, %c0_16] : memref<128x512xf32, #tpu.memory_space<vmem>>, vector<128x512xf32>
    %cst_17 = arith.constant 0.000000e+00 : f32
    %54 = vector.broadcast %cst_17 : f32 to vector<8x128xf32>
    %cst_18 = arith.constant 0.000000e+00 : f32
    %55 = vector.broadcast %cst_18 : f32 to vector<8x128xf32>
    %c0_i32 = arith.constant 0 : i32
    %c8_i32 = arith.constant 8 : i32
    %56 = arith.muli %c0_i32, %c8_i32 : i32
    %57 = tpu.assume_multiple %56, 8 : i32
    %58 = arith.index_cast %57 : i32 to index
    %c0_19 = arith.constant 0 : index
    %59 = vector.load %arg8[%58, %c0_19] : memref<64x512xf32, #tpu.memory_space<vmem>>, vector<8x512xf32>
    %cst_20 = arith.constant dense<0.000000e+00> : vector<8x512xf32>
    %60 = tpu.matmul %54, %53, %cst_20 {dimension_numbers = #tpu.dot_dimension_numbers<[1], [0], [0], [1], [0, 0, 1, 1], [], []>} : vector<8x128xf32>, vector<128x512xf32>, vector<8x512xf32> -> vector<8x512xf32>
    %61 = arith.addf %59, %60 : vector<8x512xf32>
    %62 = vector.extract_strided_slice %61 {offsets = [0, 0], sizes = [8, 128], strides = [1, 1]} : vector<8x512xf32> to vector<8x128xf32>
    %63 = arith.negf %62 : vector<8x128xf32>
    %64 = math.exp %63 : vector<8x128xf32>
    %cst_21 = arith.constant 1.000000e+00 : f32
    %65 = vector.broadcast %cst_21 : f32 to vector<8x128xf32>
    %66 = arith.addf %65, %64 : vector<8x128xf32>
    %67 = arith.divf %65, %66 : vector<8x128xf32>
    %68 = vector.extract_strided_slice %61 {offsets = [0, 128], sizes = [8, 128], strides = [1, 1]} : vector<8x512xf32> to vector<8x128xf32>
    %69 = arith.negf %68 : vector<8x128xf32>
    %70 = math.exp %69 : vector<8x128xf32>
    %cst_22 = arith.constant 1.000000e+00 : f32
    %71 = vector.broadcast %cst_22 : f32 to vector<8x128xf32>
    %72 = arith.addf %71, %70 : vector<8x128xf32>
    %73 = arith.divf %71, %72 : vector<8x128xf32>
    %74 = vector.extract_strided_slice %61 {offsets = [0, 256], sizes = [8, 128], strides = [1, 1]} : vector<8x512xf32> to vector<8x128xf32>
    %75 = math.tanh %74 : vector<8x128xf32>
    %76 = vector.extract_strided_slice %61 {offsets = [0, 384], sizes = [8, 128], strides = [1, 1]} : vector<8x512xf32> to vector<8x128xf32>
    %77 = arith.negf %76 : vector<8x128xf32>
    %78 = math.exp %77 : vector<8x128xf32>
    %cst_23 = arith.constant 1.000000e+00 : f32
    %79 = vector.broadcast %cst_23 : f32 to vector<8x128xf32>
    %80 = arith.addf %79, %78 : vector<8x128xf32>
    %81 = arith.divf %79, %80 : vector<8x128xf32>
    %82 = arith.mulf %73, %55 : vector<8x128xf32>
    %83 = arith.mulf %67, %75 : vector<8x128xf32>
    %84 = arith.addf %82, %83 : vector<8x128xf32>
    %85 = math.tanh %84 : vector<8x128xf32>
    %86 = arith.mulf %81, %85 : vector<8x128xf32>
    %c1_i32 = arith.constant 1 : i32
    %c8_i32_24 = arith.constant 8 : i32
    %87 = arith.muli %c1_i32, %c8_i32_24 : i32
    %88 = tpu.assume_multiple %87, 8 : i32
    %89 = arith.index_cast %88 : i32 to index
    %c0_25 = arith.constant 0 : index
    %90 = vector.load %arg8[%89, %c0_25] : memref<64x512xf32, #tpu.memory_space<vmem>>, vector<8x512xf32>
    %cst_26 = arith.constant dense<0.000000e+00> : vector<8x512xf32>
    %91 = tpu.matmul %86, %53, %cst_26 {dimension_numbers = #tpu.dot_dimension_numbers<[1], [0], [0], [1], [0, 0, 1, 1], [], []>} : vector<8x128xf32>, vector<128x512xf32>, vector<8x512xf32> -> vector<8x512xf32>
    %92 = arith.addf %90, %91 : vector<8x512xf32>
    %93 = vector.extract_strided_slice %92 {offsets = [0, 0], sizes = [8, 128], strides = [1, 1]} : vector<8x512xf32> to vector<8x128xf32>
    %94 = arith.negf %93 : vector<8x128xf32>
    %95 = math.exp %94 : vector<8x128xf32>
    %cst_27 = arith.constant 1.000000e+00 : f32
    %96 = vector.broadcast %cst_27 : f32 to vector<8x128xf32>
    %97 = arith.addf %96, %95 : vector<8x128xf32>
    %98 = arith.divf %96, %97 : vector<8x128xf32>
    %99 = vector.extract_strided_slice %92 {offsets = [0, 128], sizes = [8, 128], strides = [1, 1]} : vector<8x512xf32> to vector<8x128xf32>
    %100 = arith.negf %99 : vector<8x128xf32>
    %101 = math.exp %100 : vector<8x128xf32>
    %cst_28 = arith.constant 1.000000e+00 : f32
    %102 = vector.broadcast %cst_28 : f32 to vector<8x128xf32>
    %103 = arith.addf %102, %101 : vector<8x128xf32>
    %104 = arith.divf %102, %103 : vector<8x128xf32>
    %105 = vector.extract_strided_slice %92 {offsets = [0, 256], sizes = [8, 128], strides = [1, 1]} : vector<8x512xf32> to vector<8x128xf32>
    %106 = math.tanh %105 : vector<8x128xf32>
    %107 = vector.extract_strided_slice %92 {offsets = [0, 384], sizes = [8, 128], strides = [1, 1]} : vector<8x512xf32> to vector<8x128xf32>
    %108 = arith.negf %107 : vector<8x128xf32>
    %109 = math.exp %108 : vector<8x128xf32>
    %cst_29 = arith.constant 1.000000e+00 : f32
    %110 = vector.broadcast %cst_29 : f32 to vector<8x128xf32>
    %111 = arith.addf %110, %109 : vector<8x128xf32>
    %112 = arith.divf %110, %111 : vector<8x128xf32>
    %113 = arith.mulf %104, %84 : vector<8x128xf32>
    %114 = arith.mulf %98, %106 : vector<8x128xf32>
    %115 = arith.addf %113, %114 : vector<8x128xf32>
    %116 = math.tanh %115 : vector<8x128xf32>
    %117 = arith.mulf %112, %116 : vector<8x128xf32>
    %c2_i32 = arith.constant 2 : i32
    %c8_i32_30 = arith.constant 8 : i32
    %118 = arith.muli %c2_i32, %c8_i32_30 : i32
    %119 = tpu.assume_multiple %118, 8 : i32
    %120 = arith.index_cast %119 : i32 to index
    %c0_31 = arith.constant 0 : index
    %121 = vector.load %arg8[%120, %c0_31] : memref<64x512xf32, #tpu.memory_space<vmem>>, vector<8x512xf32>
    %cst_32 = arith.constant dense<0.000000e+00> : vector<8x512xf32>
    %122 = tpu.matmul %117, %53, %cst_32 {dimension_numbers = #tpu.dot_dimension_numbers<[1], [0], [0], [1], [0, 0, 1, 1], [], []>} : vector<8x128xf32>, vector<128x512xf32>, vector<8x512xf32> -> vector<8x512xf32>
    %123 = arith.addf %121, %122 : vector<8x512xf32>
    %124 = vector.extract_strided_slice %123 {offsets = [0, 0], sizes = [8, 128], strides = [1, 1]} : vector<8x512xf32> to vector<8x128xf32>
    %125 = arith.negf %124 : vector<8x128xf32>
    %126 = math.exp %125 : vector<8x128xf32>
    %cst_33 = arith.constant 1.000000e+00 : f32
    %127 = vector.broadcast %cst_33 : f32 to vector<8x128xf32>
    %128 = arith.addf %127, %126 : vector<8x128xf32>
    %129 = arith.divf %127, %128 : vector<8x128xf32>
    %130 = vector.extract_strided_slice %123 {offsets = [0, 128], sizes = [8, 128], strides = [1, 1]} : vector<8x512xf32> to vector<8x128xf32>
    %131 = arith.negf %130 : vector<8x128xf32>
    %132 = math.exp %131 : vector<8x128xf32>
    %cst_34 = arith.constant 1.000000e+00 : f32
    %133 = vector.broadcast %cst_34 : f32 to vector<8x128xf32>
    %134 = arith.addf %133, %132 : vector<8x128xf32>
    %135 = arith.divf %133, %134 : vector<8x128xf32>
    %136 = vector.extract_strided_slice %123 {offsets = [0, 256], sizes = [8, 128], strides = [1, 1]} : vector<8x512xf32> to vector<8x128xf32>
    %137 = math.tanh %136 : vector<8x128xf32>
    %138 = vector.extract_strided_slice %123 {offsets = [0, 384], sizes = [8, 128], strides = [1, 1]} : vector<8x512xf32> to vector<8x128xf32>
    %139 = arith.negf %138 : vector<8x128xf32>
    %140 = math.exp %139 : vector<8x128xf32>
    %cst_35 = arith.constant 1.000000e+00 : f32
    %141 = vector.broadcast %cst_35 : f32 to vector<8x128xf32>
    %142 = arith.addf %141, %140 : vector<8x128xf32>
    %143 = arith.divf %141, %142 : vector<8x128xf32>
    %144 = arith.mulf %135, %115 : vector<8x128xf32>
    %145 = arith.mulf %129, %137 : vector<8x128xf32>
    %146 = arith.addf %144, %145 : vector<8x128xf32>
    %147 = math.tanh %146 : vector<8x128xf32>
    %148 = arith.mulf %143, %147 : vector<8x128xf32>
    %c3_i32 = arith.constant 3 : i32
    %c8_i32_36 = arith.constant 8 : i32
    %149 = arith.muli %c3_i32, %c8_i32_36 : i32
    %150 = tpu.assume_multiple %149, 8 : i32
    %151 = arith.index_cast %150 : i32 to index
    %c0_37 = arith.constant 0 : index
    %152 = vector.load %arg8[%151, %c0_37] : memref<64x512xf32, #tpu.memory_space<vmem>>, vector<8x512xf32>
    %cst_38 = arith.constant dense<0.000000e+00> : vector<8x512xf32>
    %153 = tpu.matmul %148, %53, %cst_38 {dimension_numbers = #tpu.dot_dimension_numbers<[1], [0], [0], [1], [0, 0, 1, 1], [], []>} : vector<8x128xf32>, vector<128x512xf32>, vector<8x512xf32> -> vector<8x512xf32>
    %154 = arith.addf %152, %153 : vector<8x512xf32>
    %155 = vector.extract_strided_slice %154 {offsets = [0, 0], sizes = [8, 128], strides = [1, 1]} : vector<8x512xf32> to vector<8x128xf32>
    %156 = arith.negf %155 : vector<8x128xf32>
    %157 = math.exp %156 : vector<8x128xf32>
    %cst_39 = arith.constant 1.000000e+00 : f32
    %158 = vector.broadcast %cst_39 : f32 to vector<8x128xf32>
    %159 = arith.addf %158, %157 : vector<8x128xf32>
    %160 = arith.divf %158, %159 : vector<8x128xf32>
    %161 = vector.extract_strided_slice %154 {offsets = [0, 128], sizes = [8, 128], strides = [1, 1]} : vector<8x512xf32> to vector<8x128xf32>
    %162 = arith.negf %161 : vector<8x128xf32>
    %163 = math.exp %162 : vector<8x128xf32>
    %cst_40 = arith.constant 1.000000e+00 : f32
    %164 = vector.broadcast %cst_40 : f32 to vector<8x128xf32>
    %165 = arith.addf %164, %163 : vector<8x128xf32>
    %166 = arith.divf %164, %165 : vector<8x128xf32>
    %167 = vector.extract_strided_slice %154 {offsets = [0, 256], sizes = [8, 128], strides = [1, 1]} : vector<8x512xf32> to vector<8x128xf32>
    %168 = math.tanh %167 : vector<8x128xf32>
    %169 = vector.extract_strided_slice %154 {offsets = [0, 384], sizes = [8, 128], strides = [1, 1]} : vector<8x512xf32> to vector<8x128xf32>
    %170 = arith.negf %169 : vector<8x128xf32>
    %171 = math.exp %170 : vector<8x128xf32>
    %cst_41 = arith.constant 1.000000e+00 : f32
    %172 = vector.broadcast %cst_41 : f32 to vector<8x128xf32>
    %173 = arith.addf %172, %171 : vector<8x128xf32>
    %174 = arith.divf %172, %173 : vector<8x128xf32>
    %175 = arith.mulf %166, %146 : vector<8x128xf32>
    %176 = arith.mulf %160, %168 : vector<8x128xf32>
    %177 = arith.addf %175, %176 : vector<8x128xf32>
    %178 = math.tanh %177 : vector<8x128xf32>
    %179 = arith.mulf %174, %178 : vector<8x128xf32>
    %c4_i32 = arith.constant 4 : i32
    %c8_i32_42 = arith.constant 8 : i32
    %180 = arith.muli %c4_i32, %c8_i32_42 : i32
    %181 = tpu.assume_multiple %180, 8 : i32
    %182 = arith.index_cast %181 : i32 to index
    %c0_43 = arith.constant 0 : index
    %183 = vector.load %arg8[%182, %c0_43] : memref<64x512xf32, #tpu.memory_space<vmem>>, vector<8x512xf32>
    %cst_44 = arith.constant dense<0.000000e+00> : vector<8x512xf32>
    %184 = tpu.matmul %179, %53, %cst_44 {dimension_numbers = #tpu.dot_dimension_numbers<[1], [0], [0], [1], [0, 0, 1, 1], [], []>} : vector<8x128xf32>, vector<128x512xf32>, vector<8x512xf32> -> vector<8x512xf32>
    %185 = arith.addf %183, %184 : vector<8x512xf32>
    %186 = vector.extract_strided_slice %185 {offsets = [0, 0], sizes = [8, 128], strides = [1, 1]} : vector<8x512xf32> to vector<8x128xf32>
    %187 = arith.negf %186 : vector<8x128xf32>
    %188 = math.exp %187 : vector<8x128xf32>
    %cst_45 = arith.constant 1.000000e+00 : f32
    %189 = vector.broadcast %cst_45 : f32 to vector<8x128xf32>
    %190 = arith.addf %189, %188 : vector<8x128xf32>
    %191 = arith.divf %189, %190 : vector<8x128xf32>
    %192 = vector.extract_strided_slice %185 {offsets = [0, 128], sizes = [8, 128], strides = [1, 1]} : vector<8x512xf32> to vector<8x128xf32>
    %193 = arith.negf %192 : vector<8x128xf32>
    %194 = math.exp %193 : vector<8x128xf32>
    %cst_46 = arith.constant 1.000000e+00 : f32
    %195 = vector.broadcast %cst_46 : f32 to vector<8x128xf32>
    %196 = arith.addf %195, %194 : vector<8x128xf32>
    %197 = arith.divf %195, %196 : vector<8x128xf32>
    %198 = vector.extract_strided_slice %185 {offsets = [0, 256], sizes = [8, 128], strides = [1, 1]} : vector<8x512xf32> to vector<8x128xf32>
    %199 = math.tanh %198 : vector<8x128xf32>
    %200 = vector.extract_strided_slice %185 {offsets = [0, 384], sizes = [8, 128], strides = [1, 1]} : vector<8x512xf32> to vector<8x128xf32>
    %201 = arith.negf %200 : vector<8x128xf32>
    %202 = math.exp %201 : vector<8x128xf32>
    %cst_47 = arith.constant 1.000000e+00 : f32
    %203 = vector.broadcast %cst_47 : f32 to vector<8x128xf32>
    %204 = arith.addf %203, %202 : vector<8x128xf32>
    %205 = arith.divf %203, %204 : vector<8x128xf32>
    %206 = arith.mulf %197, %177 : vector<8x128xf32>
    %207 = arith.mulf %191, %199 : vector<8x128xf32>
    %208 = arith.addf %206, %207 : vector<8x128xf32>
    %209 = math.tanh %208 : vector<8x128xf32>
    %210 = arith.mulf %205, %209 : vector<8x128xf32>
    %c5_i32 = arith.constant 5 : i32
    %c8_i32_48 = arith.constant 8 : i32
    %211 = arith.muli %c5_i32, %c8_i32_48 : i32
    %212 = tpu.assume_multiple %211, 8 : i32
    %213 = arith.index_cast %212 : i32 to index
    %c0_49 = arith.constant 0 : index
    %214 = vector.load %arg8[%213, %c0_49] : memref<64x512xf32, #tpu.memory_space<vmem>>, vector<8x512xf32>
    %cst_50 = arith.constant dense<0.000000e+00> : vector<8x512xf32>
    %215 = tpu.matmul %210, %53, %cst_50 {dimension_numbers = #tpu.dot_dimension_numbers<[1], [0], [0], [1], [0, 0, 1, 1], [], []>} : vector<8x128xf32>, vector<128x512xf32>, vector<8x512xf32> -> vector<8x512xf32>
    %216 = arith.addf %214, %215 : vector<8x512xf32>
    %217 = vector.extract_strided_slice %216 {offsets = [0, 0], sizes = [8, 128], strides = [1, 1]} : vector<8x512xf32> to vector<8x128xf32>
    %218 = arith.negf %217 : vector<8x128xf32>
    %219 = math.exp %218 : vector<8x128xf32>
    %cst_51 = arith.constant 1.000000e+00 : f32
    %220 = vector.broadcast %cst_51 : f32 to vector<8x128xf32>
    %221 = arith.addf %220, %219 : vector<8x128xf32>
    %222 = arith.divf %220, %221 : vector<8x128xf32>
    %223 = vector.extract_strided_slice %216 {offsets = [0, 128], sizes = [8, 128], strides = [1, 1]} : vector<8x512xf32> to vector<8x128xf32>
    %224 = arith.negf %223 : vector<8x128xf32>
    %225 = math.exp %224 : vector<8x128xf32>
    %cst_52 = arith.constant 1.000000e+00 : f32
    %226 = vector.broadcast %cst_52 : f32 to vector<8x128xf32>
    %227 = arith.addf %226, %225 : vector<8x128xf32>
    %228 = arith.divf %226, %227 : vector<8x128xf32>
    %229 = vector.extract_strided_slice %216 {offsets = [0, 256], sizes = [8, 128], strides = [1, 1]} : vector<8x512xf32> to vector<8x128xf32>
    %230 = math.tanh %229 : vector<8x128xf32>
    %231 = vector.extract_strided_slice %216 {offsets = [0, 384], sizes = [8, 128], strides = [1, 1]} : vector<8x512xf32> to vector<8x128xf32>
    %232 = arith.negf %231 : vector<8x128xf32>
    %233 = math.exp %232 : vector<8x128xf32>
    %cst_53 = arith.constant 1.000000e+00 : f32
    %234 = vector.broadcast %cst_53 : f32 to vector<8x128xf32>
    %235 = arith.addf %234, %233 : vector<8x128xf32>
    %236 = arith.divf %234, %235 : vector<8x128xf32>
    %237 = arith.mulf %228, %208 : vector<8x128xf32>
    %238 = arith.mulf %222, %230 : vector<8x128xf32>
    %239 = arith.addf %237, %238 : vector<8x128xf32>
    %240 = math.tanh %239 : vector<8x128xf32>
    %241 = arith.mulf %236, %240 : vector<8x128xf32>
    %c6_i32 = arith.constant 6 : i32
    %c8_i32_54 = arith.constant 8 : i32
    %242 = arith.muli %c6_i32, %c8_i32_54 : i32
    %243 = tpu.assume_multiple %242, 8 : i32
    %244 = arith.index_cast %243 : i32 to index
    %c0_55 = arith.constant 0 : index
    %245 = vector.load %arg8[%244, %c0_55] : memref<64x512xf32, #tpu.memory_space<vmem>>, vector<8x512xf32>
    %cst_56 = arith.constant dense<0.000000e+00> : vector<8x512xf32>
    %246 = tpu.matmul %241, %53, %cst_56 {dimension_numbers = #tpu.dot_dimension_numbers<[1], [0], [0], [1], [0, 0, 1, 1], [], []>} : vector<8x128xf32>, vector<128x512xf32>, vector<8x512xf32> -> vector<8x512xf32>
    %247 = arith.addf %245, %246 : vector<8x512xf32>
    %248 = vector.extract_strided_slice %247 {offsets = [0, 0], sizes = [8, 128], strides = [1, 1]} : vector<8x512xf32> to vector<8x128xf32>
    %249 = arith.negf %248 : vector<8x128xf32>
    %250 = math.exp %249 : vector<8x128xf32>
    %cst_57 = arith.constant 1.000000e+00 : f32
    %251 = vector.broadcast %cst_57 : f32 to vector<8x128xf32>
    %252 = arith.addf %251, %250 : vector<8x128xf32>
    %253 = arith.divf %251, %252 : vector<8x128xf32>
    %254 = vector.extract_strided_slice %247 {offsets = [0, 128], sizes = [8, 128], strides = [1, 1]} : vector<8x512xf32> to vector<8x128xf32>
    %255 = arith.negf %254 : vector<8x128xf32>
    %256 = math.exp %255 : vector<8x128xf32>
    %cst_58 = arith.constant 1.000000e+00 : f32
    %257 = vector.broadcast %cst_58 : f32 to vector<8x128xf32>
    %258 = arith.addf %257, %256 : vector<8x128xf32>
    %259 = arith.divf %257, %258 : vector<8x128xf32>
    %260 = vector.extract_strided_slice %247 {offsets = [0, 256], sizes = [8, 128], strides = [1, 1]} : vector<8x512xf32> to vector<8x128xf32>
    %261 = math.tanh %260 : vector<8x128xf32>
    %262 = vector.extract_strided_slice %247 {offsets = [0, 384], sizes = [8, 128], strides = [1, 1]} : vector<8x512xf32> to vector<8x128xf32>
    %263 = arith.negf %262 : vector<8x128xf32>
    %264 = math.exp %263 : vector<8x128xf32>
    %cst_59 = arith.constant 1.000000e+00 : f32
    %265 = vector.broadcast %cst_59 : f32 to vector<8x128xf32>
    %266 = arith.addf %265, %264 : vector<8x128xf32>
    %267 = arith.divf %265, %266 : vector<8x128xf32>
    %268 = arith.mulf %259, %239 : vector<8x128xf32>
    %269 = arith.mulf %253, %261 : vector<8x128xf32>
    %270 = arith.addf %268, %269 : vector<8x128xf32>
    %271 = math.tanh %270 : vector<8x128xf32>
    %272 = arith.mulf %267, %271 : vector<8x128xf32>
    %c7_i32 = arith.constant 7 : i32
    %c8_i32_60 = arith.constant 8 : i32
    %273 = arith.muli %c7_i32, %c8_i32_60 : i32
    %274 = tpu.assume_multiple %273, 8 : i32
    %275 = arith.index_cast %274 : i32 to index
    %c0_61 = arith.constant 0 : index
    %276 = vector.load %arg8[%275, %c0_61] : memref<64x512xf32, #tpu.memory_space<vmem>>, vector<8x512xf32>
    %cst_62 = arith.constant dense<0.000000e+00> : vector<8x512xf32>
    %277 = tpu.matmul %272, %53, %cst_62 {dimension_numbers = #tpu.dot_dimension_numbers<[1], [0], [0], [1], [0, 0, 1, 1], [], []>} : vector<8x128xf32>, vector<128x512xf32>, vector<8x512xf32> -> vector<8x512xf32>
    %278 = arith.addf %276, %277 : vector<8x512xf32>
    %279 = vector.extract_strided_slice %278 {offsets = [0, 0], sizes = [8, 128], strides = [1, 1]} : vector<8x512xf32> to vector<8x128xf32>
    %280 = arith.negf %279 : vector<8x128xf32>
    %281 = math.exp %280 : vector<8x128xf32>
    %cst_63 = arith.constant 1.000000e+00 : f32
    %282 = vector.broadcast %cst_63 : f32 to vector<8x128xf32>
    %283 = arith.addf %282, %281 : vector<8x128xf32>
    %284 = arith.divf %282, %283 : vector<8x128xf32>
    %285 = vector.extract_strided_slice %278 {offsets = [0, 128], sizes = [8, 128], strides = [1, 1]} : vector<8x512xf32> to vector<8x128xf32>
    %286 = arith.negf %285 : vector<8x128xf32>
    %287 = math.exp %286 : vector<8x128xf32>
    %cst_64 = arith.constant 1.000000e+00 : f32
    %288 = vector.broadcast %cst_64 : f32 to vector<8x128xf32>
    %289 = arith.addf %288, %287 : vector<8x128xf32>
    %290 = arith.divf %288, %289 : vector<8x128xf32>
    %291 = vector.extract_strided_slice %278 {offsets = [0, 256], sizes = [8, 128], strides = [1, 1]} : vector<8x512xf32> to vector<8x128xf32>
    %292 = math.tanh %291 : vector<8x128xf32>
    %293 = vector.extract_strided_slice %278 {offsets = [0, 384], sizes = [8, 128], strides = [1, 1]} : vector<8x512xf32> to vector<8x128xf32>
    %294 = arith.negf %293 : vector<8x128xf32>
    %295 = math.exp %294 : vector<8x128xf32>
    %cst_65 = arith.constant 1.000000e+00 : f32
    %296 = vector.broadcast %cst_65 : f32 to vector<8x128xf32>
    %297 = arith.addf %296, %295 : vector<8x128xf32>
    %298 = arith.divf %296, %297 : vector<8x128xf32>
    %299 = arith.mulf %290, %270 : vector<8x128xf32>
    %300 = arith.mulf %284, %292 : vector<8x128xf32>
    %301 = arith.addf %299, %300 : vector<8x128xf32>
    %302 = math.tanh %301 : vector<8x128xf32>
    %303 = arith.mulf %298, %302 : vector<8x128xf32>
    %c8_i32_66 = arith.constant 8 : i32
    %c0_67 = arith.constant 0 : index
    %c0_68 = arith.constant 0 : index
    %304 = vector.load %arg5[%c0_67, %c0_68] : memref<128x128xf32, #tpu.memory_space<vmem>>, vector<128x128xf32>
    %cst_69 = arith.constant dense<0.000000e+00> : vector<8x128xf32>
    %305 = tpu.matmul %303, %304, %cst_69 {dimension_numbers = #tpu.dot_dimension_numbers<[1], [0], [0], [1], [0, 0, 1, 1], [], []>} : vector<8x128xf32>, vector<128x128xf32>, vector<8x128xf32> -> vector<8x128xf32>
    %c0_70 = arith.constant 0 : index
    %c0_71 = arith.constant 0 : index
    %306 = vector.load %arg6[%c0_70, %c0_71] : memref<1x128xf32, #tpu.memory_space<vmem>>, vector<1x128xf32>
    %307 = vector.broadcast %306 : vector<1x128xf32> to vector<8x128xf32>
    %308 = arith.addf %305, %307 : vector<8x128xf32>
    %c0_72 = arith.constant 0 : index
    %c0_73 = arith.constant 0 : index
    %309 = vector.load %arg7[%c0_72, %c0_73] : memref<8x128xf32, #tpu.memory_space<vmem>>, vector<8x128xf32>
    tpu.vector_store %arg7[%c0_72, %c0_73], %308 {strides = array<i32>} : memref<8x128xf32, #tpu.memory_space<vmem>>, vector<8x128xf32>,
    return
  }
  func.func @transform_0(%arg0: i32) -> (i32, i32, i32) {
    %c0_i32 = arith.constant 0 : i32
    %c0_i32_0 = arith.constant 0 : i32
    %c0_i32_1 = arith.constant 0 : i32
    return %c0_i32, %arg0, %c0_i32_0 : i32, i32, i32
  }
  func.func @transform_1(%arg0: i32) -> (i32, i32) {
    %c0_i32 = arith.constant 0 : i32
    %c0_i32_0 = arith.constant 0 : i32
    %c0_i32_1 = arith.constant 0 : i32
    return %c0_i32, %c0_i32_0 : i32, i32
  }
  func.func @transform_2(%arg0: i32) -> (i32, i32) {
    %c0_i32 = arith.constant 0 : i32
    %c0_i32_0 = arith.constant 0 : i32
    %c0_i32_1 = arith.constant 0 : i32
    return %c0_i32, %c0_i32_0 : i32, i32
  }
  func.func @transform_3(%arg0: i32) -> (i32, i32) {
    %c0_i32 = arith.constant 0 : i32
    %c0_i32_0 = arith.constant 0 : i32
    %c0_i32_1 = arith.constant 0 : i32
    return %c0_i32, %c0_i32_0 : i32, i32
  }
  func.func @transform_4(%arg0: i32) -> (i32, i32) {
    %c0_i32 = arith.constant 0 : i32
    %c0_i32_0 = arith.constant 0 : i32
    %c0_i32_1 = arith.constant 0 : i32
    return %c0_i32, %c0_i32_0 : i32, i32
  }
  func.func @transform_5(%arg0: i32) -> (i32, i32) {
    %c0_i32 = arith.constant 0 : i32
    %c0_i32_0 = arith.constant 0 : i32
    %c0_i32_1 = arith.constant 0 : i32
    return %c0_i32, %c0_i32_0 : i32, i32
  }
  func.func @transform_6(%arg0: i32) -> (i32, i32) {
    %c0_i32 = arith.constant 0 : i32
    %c0_i32_0 = arith.constant 0 : i32
    return %arg0, %c0_i32 : i32, i32
  }
}

</mosaic_0001>

<bundles_post_ra>
// kernel: bilstm_forward.1
= control target key start
LH: loop header
LB: loop body
LE: loop exit
PB: predicated region body
PF: predicated region fallthrough
CT: control target
= control target key end

     0   :  { %v3151_v3 = vmov 0.0   ;;  %vm63_vm0 = vcmask 261120   ;;  %vm3153_vm1 = vmmov 0   ;;  %s4101_s1 = inlined_call_operand.vmem [shape: f32[32,1024], index: 1, kind: input, shape index: {}]   ;;  %s4102_s0 = inlined_call_operand.vmem [shape: f32[8,8,32], index: 0, kind: input, shape index: {}]   ;;  %s4103_s3 = inlined_call_operand.vmem [shape: f32[128,512], index: 3, kind: input, shape index: {}]   ;;  %s4104_s2 = inlined_call_operand.vmem [shape: f32[1,512], index: 2, kind: input, shape index: {}]   ;;  %s4105_s4 = inlined_call_operand.vmem [shape: f32[128,128], index: 4, kind: input, shape index: {}]   ;;  %s4106_s5 = inlined_call_operand.vmem [shape: f32[1,128], index: 5, kind: input, shape index: {}]   ;;  %s4107_s6 = inlined_call_operand.vmem [shape: f32[8,128], index: 6, kind: output, shape index: {}]  }
   0x1   :  { %v32_v0 = vld [vmem:[%s4101_s1 + $0x8] sm:$0xff]  ;;  %v31_v2 = vld [vmem:[%s4101_s1] sm:$0xff]  ;;  %152 = vmatprep.mubr.f32.mxu0 %v3151_v3  ;;  %176 = vmatprep.mubr.f32.mxu1 %v3151_v3  ;;  %v34_v12 = vld [vmem:[%s4101_s1 + $0x18] sm:$0xff] }
   0x2   :  { %v40_v1 = vld [vmem:[%s4101_s1 + $0x48] sm:$0xff]  ;;  %v39_v5 = vld [vmem:[%s4101_s1 + $0x40] sm:$0xff]  ;;  %v42_v13 = vld [vmem:[%s4101_s1 + $0x58] sm:$0xff] }
   0x3   :  { %v2352_v4 = vpack.c.bf16 %v40_v1, %v32_v0  ;;  %v48_v6 = vld [vmem:[%s4101_s1 + $0x88] sm:$0xff]  ;;  %v2354_v8 = vpack.c.bf16 %v39_v5, %v31_v2  ;;  %v47_v10 = vld [vmem:[%s4101_s1 + $0x80] sm:$0xff]  ;;  %v2360_v15 = vpack.c.bf16 %v42_v13, %v34_v12  ;;  %v33_v16 = vld [vmem:[%s4101_s1 + $0x10] sm:$0xff] }
   0x4   :  { %v56_v7 = vld [vmem:[%s4101_s1 + $0xc8] sm:$0xff]  ;;  %v55_v11 = vld [vmem:[%s4101_s1 + $0xc0] sm:$0xff]  ;;  %v41_v17 = vld [vmem:[%s4101_s1 + $0x50] sm:$0xff] }
   0x5   :  { %v2356_v9 = vpack.c.bf16 %v56_v7, %v48_v6  ;;  %2353 = vmatprep.subr.bf16.mxu0 %v2352_v4  ;;  %2920 = vmatprep.subr.bf16.mxu1 %v2352_v4  ;;  %v2358_v14 = vpack.c.bf16 %v55_v11, %v47_v10  ;;  %v50_v18 = vld [vmem:[%s4101_s1 + $0x98] sm:$0xff]  ;;  %v36_v20 = vld [vmem:[%s4101_s1 + $0x28] sm:$0xff]  ;;  %v3239_v21 = vld [vmem:[%s4102_s0] sm:$0xff]  ;;  %v2362_v24 = vpack.c.bf16 %v41_v17, %v33_v16 }
   0x6   :  { %2355 = vmatpush1.bf16.msra.mxu0 %v2354_v8  ;;  %2922 = vmatpush1.bf16.msra.mxu1 %v2354_v8  ;;  %v58_v19 = vld [vmem:[%s4101_s1 + $0xd8] sm:$0xff]  ;;  %v44_v22 = vld [vmem:[%s4101_s1 + $0x68] sm:$0xff]  ;;  %v3247_v23 = vld [vmem:[%s4102_s0 + $0x20] sm:$0xff] }
   0x7   :  { %2357 = vmatprep.subr.bf16.mxu0 %v2356_v9  ;;  %2921 = vmatprep.subr.bf16.mxu1 %v2356_v9  ;;  %v2368_v25 = vpack.c.bf16 %v44_v22, %v36_v20  ;;  %v35_v26 = vld [vmem:[%s4101_s1 + $0x20] sm:$0xff]  ;;  %v2364_v28 = vpack.c.bf16 %v58_v19, %v50_v18  ;;  %v49_v29 = vld [vmem:[%s4101_s1 + $0x90] sm:$0xff]  ;;  %v52_v32 = vld [vmem:[%s4101_s1 + $0xa8] sm:$0xff] }
   0x8   :  { %v43_v27 = vld [vmem:[%s4101_s1 + $0x60] sm:$0xff]  ;;  %v57_v30 = vld [vmem:[%s4101_s1 + $0xd0] sm:$0xff]  ;;  %v60_v33 = vld [vmem:[%s4101_s1 + $0xe8] sm:$0xff] }
   0x9   :  { %v2370_v31 = vpack.c.bf16 %v43_v27, %v35_v26  ;;  %v51_v34 = vld [vmem:[%s4101_s1 + $0xa0] sm:$0xff]  ;;  %v38_v36 = vld [vmem:[%s4101_s1 + $0x38] sm:$0xff]  ;;  %v3287_v38 = vld [vmem:[%s4102_s0 + $0x8] sm:$0xff]  ;;  %v2366_v40 = vpack.c.bf16 %v57_v30, %v49_v29  ;;  %v2372_v41 = vpack.c.bf16 %v60_v33, %v52_v32 }
   0xa   :  { %2359 = vmatpush1.bf16.msra.mxu0 %v2358_v14  ;;  %2923 = vmatpush1.bf16.msra.mxu1 %v2358_v14  ;;  %v59_v35 = vld [vmem:[%s4101_s1 + $0xe0] sm:$0xff]  ;;  %v46_v37 = vld [vmem:[%s4101_s1 + $0x78] sm:$0xff]  ;;  %v3292_v39 = vld [vmem:[%s4102_s0 + $0x28] sm:$0xff] }
   0xb   :  { %2361 = vmatprep.subr.bf16.mxu1 %v2360_v15  ;;  %2369 = vmatprep.subr.bf16.mxu0 %v2368_v25  ;;  %v2374_v42 = vpack.c.bf16 %v59_v35, %v51_v34  ;;  %v2376_v43 = vpack.c.bf16 %v46_v37, %v38_v36  ;;  %v659_v44 = vld [vmem:[%s4103_s3 + $0x8] sm:$0xff]  ;;  %v3310_v46 = vld [vmem:[%s4102_s0 + $0x10] sm:$0xff]  ;;  %v3328_v49 = vld [vmem:[%s4102_s0 + $0x18] sm:$0xff] }
   0xc   :  { %v663_v45 = vld [vmem:[%s4103_s3 + $0x28] sm:$0xff]  ;;  %v3315_v47 = vld [vmem:[%s4102_s0 + $0x30] sm:$0xff]  ;;  %v3333_v50 = vld [vmem:[%s4102_s0 + $0x38] sm:$0xff] }
   0xd   :  { %2243 = vmatmul.mubr.msk.f32.vlgmr.msra.gmra.mrb[0].mxu0 %vm63_vm0, %v3239_v21  ;;  %2247 = vmatmul.mubr.msk.f32.vlgmr.msra.gmra.mrb[0].mxu1 %vm63_vm0, %v3247_v23  ;;  %v3317_v48 = vpack.c.bf16 %v663_v45, %v659_v44  ;;  %v37_v51 = vld [vmem:[%s4101_s1 + $0x30] sm:$0xff]  ;;  %v658_v53 = vld [vmem:[%s4103_s3] sm:$0xff]  ;;  %v667_v55 = vld [vmem:[%s4103_s3 + $0x48] sm:$0xff] }
   0xe   :  { %2363 = vmatpush1.bf16.msra.mxu1 %v2362_v24  ;;  %158 = vmatprep.mubr.f32.mxu0 %v3151_v3  ;;  %v45_v52 = vld [vmem:[%s4101_s1 + $0x70] sm:$0xff]  ;;  %v662_v54 = vld [vmem:[%s4103_s3 + $0x20] sm:$0xff]  ;;  %v671_v56 = vld [vmem:[%s4103_s3 + $0x68] sm:$0xff] }
   0xf   :  { %182 = vmatprep.mubr.f32.mxu1 %v3151_v3  ;;  %2365 = vmatprep.subr.bf16.mxu1 %v2364_v28  ;;  %v54_v57 = vld [vmem:[%s4101_s1 + $0xb8] sm:$0xff]  ;;  %v2378_v59 = vpack.c.bf16 %v45_v52, %v37_v51  ;;  %v3366_v60 = vpack.c.bf16 %v662_v54, %v658_v53  ;;  %v666_v61 = vld [vmem:[%s4103_s3 + $0x40] sm:$0xff]  ;;  %v3374_v63 = vpack.c.bf16 %v671_v56, %v667_v55  ;;  %v675_v0 = vld [vmem:[%s4103_s3 + $0x88] sm:$0xff] }
  0x10   :  { %2371 = vmatpush1.bf16.msra.mxu0 %v2370_v31  ;;  %v62_v58 = vld [vmem:[%s4101_s1 + $0xf8] sm:$0xff]  ;;  %v670_v62 = vld [vmem:[%s4103_s3 + $0x60] sm:$0xff]  ;;  %v53_v2 = vld [vmem:[%s4101_s1 + $0xb0] sm:$0xff] }
  0x11   :  { %2244 = vmatmul.mubr.msk.f32.gmra.mrb[2].mxu0 %vm63_vm0, %v3287_v38  ;;  %2248 = vmatmul.mubr.msk.f32.gmra.mrb[2].mxu1 %vm63_vm0, %v3292_v39  ;;  %v2380_v1 = vpack.c.bf16 %v62_v58, %v54_v57  ;;  %v61_v4 = vld [vmem:[%s4101_s1 + $0xf0] sm:$0xff]  ;;  %v679_v5 = vld [vmem:[%s4103_s3 + $0xa8] sm:$0xff]  ;;  %v661_v6 = vld [vmem:[%s4103_s3 + $0x18] sm:$0xff]  ;;  %v3401_v8 = vpack.c.bf16 %v670_v62, %v666_v61 }
  0x12   :  { %164 = vmatprep.mubr.f32.mxu0 %v3151_v3  ;;  %188 = vmatprep.mubr.f32.mxu1 %v3151_v3  ;;  %v665_v7 = vld [vmem:[%s4103_s3 + $0x38] sm:$0xff]  ;;  %v2382_v9 = vpack.c.bf16 %v61_v4, %v53_v2  ;;  %v3404_v10 = vpack.c.bf16 %v679_v5, %v675_v0  ;;  %v674_v11 = vld [vmem:[%s4103_s3 + $0x80] sm:$0xff]  ;;  %v683_v14 = vld [vmem:[%s4103_s3 + $0xc8] sm:$0xff] }
  0x13   :  { %2367 = vmatpush1.bf16.msra.mxu1 %v2366_v40  ;;  %2373 = vmatprep.subr.bf16.mxu0 %v2372_v41  ;;  %v678_v12 = vld [vmem:[%s4103_s3 + $0xa0] sm:$0xff]  ;;  %v3412_v13 = vpack.c.bf16 %v665_v7, %v661_v6  ;;  %v687_v15 = vld [vmem:[%s4103_s3 + $0xe8] sm:$0xff]  ;;  %v660_v54 = vld [vmem:[%s4103_s3 + $0x10] sm:$0xff] }
  0x14   :  { %2375 = vmatpush1.bf16.msra.mxu0 %v2374_v42  ;;  %2377 = vmatprep.subr.bf16.mxu1 %v2376_v43  ;;  %v3427_v16 = vpack.c.bf16 %v678_v12, %v674_v11  ;;  %v3430_v17 = vpack.c.bf16 %v687_v15, %v683_v14  ;;  %v682_v18 = vld [vmem:[%s4103_s3 + $0xc0] sm:$0xff]  ;;  %v691_v20 = vld [vmem:[%s4103_s3 + $0x108] sm:$0xff]  ;;  %v664_v55 = vld [vmem:[%s4103_s3 + $0x30] sm:$0xff] }
  0x15   :  { %2245 = vmatmul.mubr.msk.f32.gmra.mrb[4].mxu0 %vm63_vm0, %v3310_v46  ;;  %2249 = vmatmul.mubr.msk.f32.gmra.mrb[4].mxu1 %vm63_vm0, %v3315_v47  ;;  %v686_v19 = vld [vmem:[%s4103_s3 + $0xe0] sm:$0xff]  ;;  %v695_v22 = vld [vmem:[%s4103_s3 + $0x128] sm:$0xff]  ;;  %v669_v56 = vld [vmem:[%s4103_s3 + $0x58] sm:$0xff]  ;;  %v3565_v58 = vpack.c.bf16 %v664_v55, %v660_v54 }
  0x16   :  { %170 = vmatprep.mubr.f32.mxu0 %v3151_v3  ;;  %194 = vmatprep.mubr.f32.mxu1 %v3151_v3  ;;  %v3452_v24 = vpack.c.bf16 %v686_v19, %v682_v18  ;;  %v3455_v25 = vpack.c.bf16 %v695_v22, %v691_v20  ;;  %v690_v26 = vld [vmem:[%s4103_s3 + $0x100] sm:$0xff]  ;;  %v699_v28 = vld [vmem:[%s4103_s3 + $0x148] sm:$0xff]  ;;  %v673_v57 = vld [vmem:[%s4103_s3 + $0x78] sm:$0xff] }
  0x17   :  { %2385 = vmatprep.subr.bf16.mxu0 %v3317_v48  ;;  %v694_v27 = vld [vmem:[%s4103_s3 + $0x120] sm:$0xff]  ;;  %v703_v29 = vld [vmem:[%s4103_s3 + $0x168] sm:$0xff]  ;;  %v668_v61 = vld [vmem:[%s4103_s3 + $0x50] sm:$0xff] }
  0x18   :  { %v3476_v30 = vpack.c.bf16 %v694_v27, %v690_v26  ;;  %v3479_v31 = vpack.c.bf16 %v703_v29, %v699_v28  ;;  %v698_v32 = vld [vmem:[%s4103_s3 + $0x140] sm:$0xff]  ;;  %v707_v34 = vld [vmem:[%s4103_s3 + $0x188] sm:$0xff]  ;;  %v672_v62 = vld [vmem:[%s4103_s3 + $0x70] sm:$0xff] }
  0x19   :  { %2246 = vmatmul.mubr.msk.f32.gmra.mrb[6].mxu0 %vm63_vm0, %v3328_v49  ;;  %2250 = vmatmul.mubr.msk.f32.gmra.mrb[6].mxu1 %vm63_vm0, %v3333_v50  ;;  %v702_v33 = vld [vmem:[%s4103_s3 + $0x160] sm:$0xff]  ;;  %v711_v35 = vld [vmem:[%s4103_s3 + $0x1a8] sm:$0xff]  ;;  %v677_v0 = vld [vmem:[%s4103_s3 + $0x98] sm:$0xff]  ;;  %v3586_v2 = vpack.c.bf16 %v672_v62, %v668_v61 }
  0x1a   :  { %265 = vmatprep.mubr.f32.mxu1 %v3151_v3  ;;  %378 = vmatprep.mubr.f32.mxu0 %v3151_v3  ;;  %v3500_v36 = vpack.c.bf16 %v702_v33, %v698_v32  ;;  %v3503_v37 = vpack.c.bf16 %v711_v35, %v707_v34  ;;  %v706_v40 = vld [vmem:[%s4103_s3 + $0x180] sm:$0xff]  ;;  %v715_v42 = vld [vmem:[%s4103_s3 + $0x1c8] sm:$0xff]  ;;  %v676_v5 = vld [vmem:[%s4103_s3 + $0x90] sm:$0xff] }
  0x1b   :  { %v710_v41 = vld [vmem:[%s4103_s3 + $0x1a0] sm:$0xff]  ;;  %v719_v43 = vld [vmem:[%s4103_s3 + $0x1e8] sm:$0xff]  ;;  %v685_v6 = vld [vmem:[%s4103_s3 + $0xd8] sm:$0xff] }
  0x1c   :  { %v3524_v44 = vpack.c.bf16 %v710_v41, %v706_v40  ;;  %v3527_v45 = vpack.c.bf16 %v719_v43, %v715_v42  ;;  %v714_v51 = vld [vmem:[%s4103_s3 + $0x1c0] sm:$0xff]  ;;  %v689_v7 = vld [vmem:[%s4103_s3 + $0xf8] sm:$0xff]  ;;  %v684_v12 = vld [vmem:[%s4103_s3 + $0xd0] sm:$0xff] }
  0x1d   :  { %2251 = vmatmul.mubr.msk.f32.vlgmr.msra.gmra.mrb[8].mxu1 %vm63_vm0, %v3239_v21  ;;  %2259 = vmatmul.mubr.msk.f32.vlgmr.msra.gmra.mrb[8].mxu0 %vm63_vm0, %v3239_v21  ;;  %v718_v52 = vld [vmem:[%s4103_s3 + $0x1e0] sm:$0xff]  ;;  %v3613_v11 = vpack.c.bf16 %v689_v7, %v685_v6  ;;  %v688_v14 = vld [vmem:[%s4103_s3 + $0xf0] sm:$0xff]  ;;  %v697_v15 = vld [vmem:[%s4103_s3 + $0x138] sm:$0xff] }
  0x1e   :  { %2379 = vmatpush1.bf16.msra.mxu1 %v2378_v59  ;;  %271 = vmatprep.mubr.f32.mxu1 %v3151_v3  ;;  %v3542_v53 = vpack.c.bf16 %v718_v52, %v714_v51  ;;  %v3567_v59 = vpack.c.bf16 %v673_v57, %v669_v56  ;;  %v3633_v18 = vpack.c.bf16 %v688_v14, %v684_v12  ;;  %v692_v20 = vld [vmem:[%s4103_s3 + $0x110] sm:$0xff]  ;;  %v705_v26 = vld [vmem:[%s4103_s3 + $0x178] sm:$0xff]  ;;  %v540_v12 = vld [vmem:[%s4104_s2] sm:$0xf] }
  0x1f   :  { %384 = vmatprep.mubr.f32.mxu0 %v3151_v3  ;;  %2387 = vmatpush1.bf16.msra.mxu0 %v3366_v60  ;;  %v696_v22 = vld [vmem:[%s4103_s3 + $0x130] sm:$0xff]  ;;  %v713_v33 = vld [vmem:[%s4103_s3 + $0x1b8] sm:$0xff] }
  0x20   :  { %2389 = vmatprep.subr.bf16.mxu0 %v3374_v63  ;;  %2381 = vmatprep.subr.bf16.mxu1 %v2380_v1  ;;  %v681_v1 = vld [vmem:[%s4103_s3 + $0xb8] sm:$0xff]  ;;  %v3656_v27 = vpack.c.bf16 %v696_v22, %v692_v20  ;;  %v700_v29 = vld [vmem:[%s4103_s3 + $0x150] sm:$0xff] }
  0x21   :  { %2252 = vmatmul.mubr.msk.f32.gmra.mrb[10].mxu1 %vm63_vm0, %v3287_v38  ;;  %2260 = vmatmul.mubr.msk.f32.gmra.mrb[10].mxu0 %vm63_vm0, %v3287_v38  ;;  %v3589_v4 = vpack.c.bf16 %v681_v1, %v677_v0  ;;  %v704_v32 = vld [vmem:[%s4103_s3 + $0x170] sm:$0xff]  ;;  %v721_v42 = vld [vmem:[%s4103_s3 + $0x1f8] sm:$0xff]  ;;  %v546_v1 = vlaneseq }
  0x22   :  { %277 = vmatprep.mubr.f32.mxu1 %v3151_v3  ;;  %390 = vmatprep.mubr.f32.mxu0 %v3151_v3  ;;  %v3679_v34 = vpack.c.bf16 %v704_v32, %v700_v29  ;;  %v708_v40 = vld [vmem:[%s4103_s3 + $0x190] sm:$0xff] }
  0x23   :  { %2391 = vmatpush1.bf16.msra.mxu0 %v3401_v8  ;;  %2383 = vmatpush1.bf16.msra.mxu1 %v2382_v9  ;;  %v712_v41 = vld [vmem:[%s4103_s3 + $0x1b0] sm:$0xff]  ;;  %v547_v6 = vshrl.u32 %v546_v1, 7 }
  0x24   :  { %2393 = vmatprep.subr.bf16.mxu0 %v3404_v10  ;;  %2417 = vmatprep.subr.bf16.mxu1 %v3412_v13  ;;  %v3702_v43 = vpack.c.bf16 %v712_v41, %v708_v40  ;;  %v716_v52 = vld [vmem:[%s4103_s3 + $0x1d0] sm:$0xff] }
  0x25   :  { %2253 = vmatmul.mubr.msk.f32.gmra.mrb[12].mxu1 %vm63_vm0, %v3310_v46  ;;  %2261 = vmatmul.mubr.msk.f32.gmra.mrb[12].mxu0 %vm63_vm0, %v3310_v46  ;;  %v720_v54 = vld [vmem:[%s4103_s3 + $0x1f0] sm:$0xff]  ;;  %v552_v7 = vsub.s32 1, %v547_v6  ;;  %v548_v14 = vsub.s32 0, %v547_v6  ;;  %v556_v29 = vsub.s32 2, %v547_v6 }
  0x26   :  { %283 = vmatprep.mubr.f32.mxu1 %v3151_v3  ;;  %396 = vmatprep.mubr.f32.mxu0 %v3151_v3 }
  0x27   :  { %2395 = vmatpush1.bf16.msra.mxu0 %v3427_v16  ;;  %v3774_v41 = vrot.slane %v540_v12, %v556_v29 }
  0x28   :  { %2397 = vmatprep.subr.bf16.mxu0 %v3430_v17 }
  0x29   :  { %2254 = vmatmul.mubr.msk.f32.gmra.mrb[14].mxu1 %vm63_vm0, %v3328_v49  ;;  %2262 = vmatmul.mubr.msk.f32.gmra.mrb[14].mxu0 %vm63_vm0, %v3328_v49 }
  0x2a   :  { %289 = vmatprep.mubr.f32.mxu1 %v3151_v3  ;;  %402 = vmatprep.mubr.f32.mxu0 %v3151_v3 }
  0x2b   :  { %2399 = vmatpush1.bf16.msra.mxu0 %v3452_v24 }
  0x2c   :  { %2401 = vmatprep.subr.bf16.mxu0 %v3455_v25 }
  0x2d   :  { %2255 = vmatmul.mubr.msk.f32.gmra.mrb[16].mxu1 %vm63_vm0, %v3247_v23  ;;  %2263 = vmatmul.mubr.msk.f32.gmra.mrb[6].mxu0 %vm63_vm0, %v3247_v23 }
  0x2e   :  { %295 = vmatprep.mubr.f32.mxu1 %v3151_v3  ;;  %408 = vmatprep.mubr.f32.mxu0 %v3151_v3 }
  0x2f   :  { %2403 = vmatpush1.bf16.msra.mxu0 %v3476_v30 }
  0x30   :  { %2405 = vmatprep.subr.bf16.mxu0 %v3479_v31 }
  0x31   :  { %2256 = vmatmul.mubr.msk.f32.gmra.mrb[18].mxu1 %vm63_vm0, %v3292_v39  ;;  %2264 = vmatmul.mubr.msk.f32.gmra.mrb[4].mxu0 %vm63_vm0, %v3292_v39 }
  0x32   :  { %301 = vmatprep.mubr.f32.mxu1 %v3151_v3  ;;  %414 = vmatprep.mubr.f32.mxu0 %v3151_v3 }
  0x33   :  { %2407 = vmatpush1.bf16.msra.mxu0 %v3500_v36 }
  0x34   :  { %2409 = vmatprep.subr.bf16.mxu0 %v3503_v37 }
  0x35   :  { %2257 = vmatmul.mubr.msk.f32.gmra.mrb[20].mxu1 %vm63_vm0, %v3315_v47  ;;  %2265 = vmatmul.mubr.msk.f32.gmra.mrb[2].mxu0 %vm63_vm0, %v3315_v47 }
  0x36   :  { %307 = vmatprep.mubr.f32.mxu1 %v3151_v3  ;;  %420 = vmatprep.mubr.f32.mxu0 %v3151_v3 }
  0x37   :  { %2411 = vmatpush1.bf16.msra.mxu0 %v3524_v44 }
  0x38   :  { %2413 = vmatprep.subr.bf16.mxu0 %v3527_v45 }
  0x39   :  { %2258 = vmatmul.mubr.msk.f32.gmra.mrb[22].mxu1 %vm63_vm0, %v3333_v50  ;;  %2266 = vmatmul.mubr.msk.f32.gmra.mrb[0].mxu0 %vm63_vm0, %v3333_v50 }
  0x3a   :  { %491 = vmatprep.mubr.f32.mxu1 %v3151_v3  ;;  %793 = vmatprep.mubr.f32.mxu0 %v3151_v3 }
  0x3b   :  { %2415 = vmatpush1.bf16.msra.mxu0 %v3542_v53 }
  0x3c   :  { %2449 = vmatprep.subr.bf16.mxu0 %v3317_v48 }
  0x41   :  { %2267 = vmatmul.mubr.msk.f32.vlgmr.msra.gmra.mrb[22].mxu1 %vm63_vm0, %v3239_v21  ;;  %794 = vmatmul.mubr.f32.vlgmr.msra.gmra.mrb[0].mxu0 %v3151_v3  ;;  %v680_v21 = vld [vmem:[%s4103_s3 + $0xb0] sm:$0xff] }
  0x42   :  { %2419 = vmatpush1.bf16.msra.mxu1 %v3565_v58  ;;  %497 = vmatprep.mubr.f32.mxu1 %v3151_v3  ;;  %v3610_v9 = vpack.c.bf16 %v680_v21, %v676_v5 }
  0x43   :  { %2421 = vmatprep.subr.bf16.mxu1 %v3567_v59  ;;  %2451 = vmatpush1.bf16.msra.mxu0 %v3366_v60 }
  0x44   :  { %2453 = vmatprep.subr.bf16.mxu0 %v3374_v63  ;;  %970 = vmatprep.mubr.f32.mxu0 %v3151_v3 }
  0x45   :  { %2268 = vmatmul.mubr.msk.f32.gmra.mrb[20].mxu1 %vm63_vm0, %v3287_v38  ;;  %v693_v38 = vld [vmem:[%s4103_s3 + $0x118] sm:$0xff] }
  0x46   :  { %2423 = vmatpush1.bf16.msra.mxu1 %v3586_v2  ;;  %503 = vmatprep.mubr.f32.mxu1 %v3151_v3  ;;  %v3636_v19 = vpack.c.bf16 %v697_v15, %v693_v38  ;;  %v3768_v38 = vrot.slane %v540_v12, %v552_v7  ;;  %v3770_v15 = vrot.slane %v540_v12, %v548_v14 }
  0x47   :  { %2425 = vmatprep.subr.bf16.mxu1 %v3589_v4  ;;  %2455 = vmatpush1.bf16.msra.mxu0 %v3401_v8 }
  0x48   :  { %2457 = vmatprep.subr.bf16.mxu0 %v3404_v10 }
  0x49   :  { %2269 = vmatmul.mubr.msk.f32.gmra.mrb[18].mxu1 %vm63_vm0, %v3310_v46  ;;  %v701_v46 = vld [vmem:[%s4103_s3 + $0x158] sm:$0xff] }
  0x4a   :  { %2427 = vmatpush1.bf16.msra.mxu1 %v3610_v9  ;;  %509 = vmatprep.mubr.f32.mxu1 %v3151_v3  ;;  %v3659_v28 = vpack.c.bf16 %v705_v26, %v701_v46 }
  0x4b   :  { %2429 = vmatprep.subr.bf16.mxu1 %v3613_v11  ;;  %2459 = vmatpush1.bf16.msra.mxu0 %v3427_v16 }
  0x4c   :  { %2461 = vmatprep.subr.bf16.mxu0 %v3430_v17 }
  0x4d   :  { %2270 = vmatmul.mubr.msk.f32.gmra.mrb[16].mxu1 %vm63_vm0, %v3328_v49  ;;  %v709_v49 = vld [vmem:[%s4103_s3 + $0x198] sm:$0xff] }
  0x4e   :  { %515 = vmatprep.mubr.f32.mxu1 %v3151_v3  ;;  %2431 = vmatpush1.bf16.msra.mxu1 %v3633_v18  ;;  %v3682_v35 = vpack.c.bf16 %v713_v33, %v709_v49  ;;  %v560_v49 = vsub.s32 3, %v547_v6 }
  0x4f   :  { %2433 = vmatprep.subr.bf16.mxu1 %v3636_v19  ;;  %2463 = vmatpush1.bf16.msra.mxu0 %v3452_v24 }
  0x50   :  { %2465 = vmatprep.subr.bf16.mxu0 %v3455_v25 }
  0x51   :  { %2271 = vmatmul.mubr.msk.f32.gmra.mrb[14].mxu1 %vm63_vm0, %v3247_v23  ;;  %v717_v23 = vld [vmem:[%s4103_s3 + $0x1d8] sm:$0xff] }
  0x52   :  { %521 = vmatprep.mubr.f32.mxu1 %v3151_v3  ;;  %2435 = vmatpush1.bf16.msra.mxu1 %v3656_v27  ;;  %v3705_v51 = vpack.c.bf16 %v721_v42, %v717_v23  ;;  %v3776_v42 = vrot.slane %v540_v12, %v560_v49 }
  0x53   :  { %2437 = vmatprep.subr.bf16.mxu1 %v3659_v28  ;;  %2467 = vmatpush1.bf16.msra.mxu0 %v3476_v30 }
  0x54   :  { %2469 = vmatprep.subr.bf16.mxu0 %v3479_v31 }
  0x55   :  { %2272 = vmatmul.mubr.msk.f32.gmra.mrb[12].mxu1 %vm63_vm0, %v3292_v39  ;;  %v3719_v39 = vpack.c.bf16 %v720_v54, %v716_v52 }
  0x56   :  { %527 = vmatprep.mubr.f32.mxu1 %v3151_v3  ;;  %2439 = vmatpush1.bf16.msra.mxu1 %v3679_v34 }
  0x57   :  { %2441 = vmatprep.subr.bf16.mxu1 %v3682_v35  ;;  %2471 = vmatpush1.bf16.msra.mxu0 %v3500_v36 }
  0x58   :  { %2473 = vmatprep.subr.bf16.mxu0 %v3503_v37 }
  0x59   :  { %2273 = vmatmul.mubr.msk.f32.gmra.mrb[10].mxu1 %vm63_vm0, %v3315_v47 }
  0x5a   :  { %533 = vmatprep.mubr.f32.mxu1 %v3151_v3  ;;  %2443 = vmatpush1.bf16.msra.mxu1 %v3702_v43 }
  0x5b   :  { %2445 = vmatprep.subr.bf16.mxu1 %v3705_v51  ;;  %2475 = vmatpush1.bf16.msra.mxu0 %v3524_v44 }
  0x5c   :  { %2477 = vmatprep.subr.bf16.mxu0 %v3527_v45 }
  0x5d   :  { %2274 = vmatmul.mubr.msk.f32.gmra.mrb[8].mxu1 %vm63_vm0, %v3333_v50 }
  0x5e   :  { %2447 = vmatpush1.bf16.msra.mxu1 %v3719_v39  ;;  %864 = vmatprep.mubr.f32.mxu1 %v3151_v3 }
  0x5f   :  { %2481 = vmatprep.subr.bf16.mxu1 %v3412_v13  ;;  %2479 = vmatpush1.bf16.msra.mxu0 %v3542_v53 }
  0x60   :  { %2513 = vmatprep.subr.bf16.mxu0 %v3317_v48 }
  0x65   :  { %865 = vmatmul.mubr.f32.vlgmr.msra.gmra.mrb[8].mxu1 %v3151_v3 }
  0x66   :  { %2483 = vmatpush1.bf16.msra.mxu1 %v3565_v58  ;;  %1041 = vmatprep.mubr.f32.mxu1 %v3151_v3 }
  0x67   :  { %2485 = vmatprep.subr.bf16.mxu1 %v3567_v59 }
  0x6a   :  { %2487 = vmatpush1.bf16.msra.mxu1 %v3586_v2 }
  0x6b   :  { %2489 = vmatprep.subr.bf16.mxu1 %v3589_v4 }
  0x6e   :  { %2491 = vmatpush1.bf16.msra.mxu1 %v3610_v9 }
  0x6f   :  { %2493 = vmatprep.subr.bf16.mxu1 %v3613_v11 }
  0x72   :  { %2495 = vmatpush1.bf16.msra.mxu1 %v3633_v18 }
  0x73   :  { %2497 = vmatprep.subr.bf16.mxu1 %v3636_v19 }
  0x76   :  { %2499 = vmatpush1.bf16.msra.mxu1 %v3656_v27 }
  0x77   :  { %2501 = vmatprep.subr.bf16.mxu1 %v3659_v28 }
  0x7a   :  { %2503 = vmatpush1.bf16.msra.mxu1 %v3679_v34 }
  0x7b   :  { %2505 = vmatprep.subr.bf16.mxu1 %v3682_v35 }
  0x7e   :  { %2507 = vmatpush1.bf16.msra.mxu1 %v3702_v43 }
  0x7f   :  { %2509 = vmatprep.subr.bf16.mxu1 %v3705_v51 }
  0x82   :  { %2511 = vmatpush1.bf16.msra.mxu1 %v3719_v39 }
  0x83   :  { %2545 = vmatprep.subr.bf16.mxu1 %v3412_v13 }
  0xe0   :  { %v3749_v47 = vpop.f32.mrb[0].mxu1 }
  0xe1   :  { %v3751_v50 = vpop.f32.mrb[1].mxu1 }
  0xe4   :  { %v3753_v55 = vpop.f32.mrb[2].mxu1 }
  0xe5   :  { %v3755_v56 = vpop.f32.mrb[3].mxu1 }
  0xe8   :  { %v3757_v57 = vpop.f32.mrb[4].mxu1 }
  0xe9   :  { %v3759_v61 = vpop.f32.mrb[5].mxu1 }
  0xec   :  { %v3761_v62 = vpop.f32.mrb[6].mxu1 }
  0xed   :  { %v3763_v0 = vpop.f32.mrb[7].mxu1 }
 0x114   :  { %v795_v5 = vpop.f32.mrb[0].mxu0 }
 0x115   :  { %v797_v21 = vpop.f32.mrb[1].mxu0  ;;  %v2924_v22 = vadd.f32 %v795_v5, %v3770_v15 }
 0x116   :  { %v2925_v20 = vadd.f32 %v797_v21, %v3768_v38 }
 0x117   :  { %v2275_v26 = vmul.f32 -1.442695, %v2924_v22 }
 0x118   :  { %v2276_v46 = vmul.f32 -1.442695, %v2925_v20 }
 0x11a   :  { %3023 = vpow2.f32 %v2276_v46 }
 0x11b   :  { %3025 = vpow2.f32 %v2275_v26 }
 0x124   :  { %v3024_v32 = vpop.eup %3023 }
 0x125   :  { %v3026_v33 = vpop.eup %3025  ;;  %v884_v40 = vadd.f32 1.0, %v3024_v32 }
 0x126   :  { %v878_v23 = vadd.f32 1.0, %v3026_v33 }
 0x127   :  { %3027 = vrcp.f32 %v884_v40 }
 0x128   :  { %3029 = vrcp.f32 %v878_v23 }
 0x131   :  { %v3028_v7 = vpop.eup %3027 }
 0x132   :  { %v3030_v6 = vpop.eup %3029  ;;  %v894_v20 = vmul.f32 0.0, %v3028_v7 }
 0x138   :  { %v866_v52 = vpop.f32.mrb[8].mxu1 }
 0x139   :  { %v2948_v54 = vadd.f32 %v866_v52, %v3774_v41  ;;  %v868_v1 = vpop.f32.mrb[9].mxu1 }
 0x13a   :  { %v2949_v5 = vadd.f32 %v868_v1, %v3776_v42 }
 0x13b   :  { %3031 = vtanh.f32 %v2948_v54 }
 0x13c   :  { %v2277_v21 = vmul.f32 -1.442695, %v2949_v5 }
 0x13e   :  { %3033 = vpow2.f32 %v2277_v21 }
 0x145   :  { %v3032_v14 = vpop.eup %3031 }
 0x146   :  { %v895_v22 = vmul.f32 %v3032_v14, %v3030_v6 }
 0x148   :  { %v3034_v46 = vpop.eup %3033  ;;  %v3780_v26 = vadd.f32 %v895_v22, %v894_v20 }
 0x149   :  { %v891_v12 = vadd.f32 1.0, %v3034_v46 }
 0x14a   :  { %3035 = vtanh.f32 %v3780_v26 }
 0x14b   :  { %3037 = vrcp.f32 %v891_v12 }
 0x154   :  { %v3036_v29 = vpop.eup %3035 }
 0x155   :  { %v3038_v32 = vpop.eup %3037 }
 0x156   :  { %v898_v49 = vmul.f32 %v3038_v32, %v3036_v29 }
 0x158   :  { %971 = vmatmul.mubr.f32.vlgmr.msra.gmra.mrb[2].mxu0 %v898_v49  ;;  %1042 = vmatmul.mubr.f32.vlgmr.msra.gmra.mrb[10].mxu1 %v898_v49 }
 0x159   :  { %2515 = vmatpush1.bf16.msra.mxu0 %v3366_v60  ;;  %2547 = vmatpush1.bf16.msra.mxu1 %v3565_v58 }
 0x15a   :  { %2517 = vmatprep.subr.bf16.mxu0 %v3374_v63  ;;  %2549 = vmatprep.subr.bf16.mxu1 %v3567_v59 }
 0x15b   :  { %1147 = vmatprep.mubr.f32.mxu0 %v3151_v3  ;;  %1218 = vmatprep.mubr.f32.mxu1 %v3151_v3 }
 0x15d   :  { %2519 = vmatpush1.bf16.msra.mxu0 %v3401_v8  ;;  %2551 = vmatpush1.bf16.msra.mxu1 %v3586_v2 }
 0x15e   :  { %2521 = vmatprep.subr.bf16.mxu0 %v3404_v10  ;;  %2553 = vmatprep.subr.bf16.mxu1 %v3589_v4 }
 0x161   :  { %2523 = vmatpush1.bf16.msra.mxu0 %v3427_v16  ;;  %2555 = vmatpush1.bf16.msra.mxu1 %v3610_v9 }
 0x162   :  { %2525 = vmatprep.subr.bf16.mxu0 %v3430_v17  ;;  %2557 = vmatprep.subr.bf16.mxu1 %v3613_v11 }
 0x165   :  { %2527 = vmatpush1.bf16.msra.mxu0 %v3452_v24  ;;  %2559 = vmatpush1.bf16.msra.mxu1 %v3633_v18 }
 0x166   :  { %2529 = vmatprep.subr.bf16.mxu0 %v3455_v25  ;;  %2561 = vmatprep.subr.bf16.mxu1 %v3636_v19 }
 0x169   :  { %2531 = vmatpush1.bf16.msra.mxu0 %v3476_v30  ;;  %2563 = vmatpush1.bf16.msra.mxu1 %v3656_v27 }
 0x16a   :  { %2533 = vmatprep.subr.bf16.mxu0 %v3479_v31  ;;  %2565 = vmatprep.subr.bf16.mxu1 %v3659_v28 }
 0x16d   :  { %2535 = vmatpush1.bf16.msra.mxu0 %v3500_v36  ;;  %2567 = vmatpush1.bf16.msra.mxu1 %v3679_v34 }
 0x16e   :  { %2537 = vmatprep.subr.bf16.mxu0 %v3503_v37  ;;  %2569 = vmatprep.subr.bf16.mxu1 %v3682_v35 }
 0x171   :  { %2539 = vmatpush1.bf16.msra.mxu0 %v3524_v44  ;;  %2571 = vmatpush1.bf16.msra.mxu1 %v3702_v43 }
 0x172   :  { %2541 = vmatprep.subr.bf16.mxu0 %v3527_v45  ;;  %2573 = vmatprep.subr.bf16.mxu1 %v3705_v51 }
 0x175   :  { %2543 = vmatpush1.bf16.msra.mxu0 %v3542_v53  ;;  %2575 = vmatpush1.bf16.msra.mxu1 %v3719_v39 }
 0x176   :  { %2577 = vmatprep.subr.bf16.mxu0 %v3317_v48  ;;  %2609 = vmatprep.subr.bf16.mxu1 %v3412_v13 }
 0x22b   :  { %v972_v33 = vpop.f32.mrb[2].mxu0  ;;  %v1043_v40 = vpop.f32.mrb[10].mxu1 }
 0x22c   :  { %v2926_v23 = vadd.f32 %v972_v33, %v3770_v15  ;;  %v974_v52 = vpop.f32.mrb[3].mxu0  ;;  %v1045_v54 = vpop.f32.mrb[11].mxu1  ;;  %v2950_v14 = vadd.f32 %v1043_v40, %v3774_v41 }
 0x22d   :  { %v2927_v1 = vadd.f32 %v974_v52, %v3768_v38  ;;  %v2951_v7 = vadd.f32 %v1045_v54, %v3776_v42 }
 0x22e   :  { %v2278_v5 = vmul.f32 -1.442695, %v2926_v23 }
 0x22f   :  { %v2279_v21 = vmul.f32 -1.442695, %v2927_v1  ;;  %v2280_v6 = vmul.f32 -1.442695, %v2951_v7 }
 0x230   :  { %3039 = vpow2.f32 %v2278_v5 }
 0x231   :  { %3041 = vpow2.f32 %v2279_v21 }
 0x232   :  { %3043 = vpow2.f32 %v2280_v6 }
 0x233   :  { %3045 = vtanh.f32 %v2950_v14 }
 0x23a   :  { %v3040_v20 = vpop.eup %3039 }
 0x23b   :  { %v3042_v22 = vpop.eup %3041  ;;  %v1055_v46 = vadd.f32 1.0, %v3040_v20 }
 0x23c   :  { %v1061_v12 = vadd.f32 1.0, %v3042_v22  ;;  %v3044_v29 = vpop.eup %3043 }
 0x23d   :  { %3047 = vrcp.f32 %v1055_v46  ;;  %v3046_v32 = vpop.eup %3045  ;;  %v1068_v52 = vadd.f32 1.0, %v3044_v29 }
 0x23e   :  { %3049 = vrcp.f32 %v1061_v12 }
 0x23f   :  { %3051 = vrcp.f32 %v1068_v52 }
 0x247   :  { %v3048_v49 = vpop.eup %3047 }
 0x248   :  { %v3050_v33 = vpop.eup %3049  ;;  %v1072_v23 = vmul.f32 %v3048_v49, %v3046_v32 }
 0x249   :  { %v1071_v1 = vmul.f32 %v3050_v33, %v3780_v26  ;;  %v3052_v40 = vpop.eup %3051 }
 0x24b   :  { %v3822_v54 = vadd.f32 %v1072_v23, %v1071_v1 }
 0x24d   :  { %3053 = vtanh.f32 %v3822_v54 }
 0x257   :  { %v3054_v5 = vpop.eup %3053 }
 0x258   :  { %v1075_v21 = vmul.f32 %v3054_v5, %v3052_v40 }
 0x25a   :  { %1148 = vmatmul.mubr.f32.vlgmr.msra.gmra.mrb[4].mxu0 %v1075_v21  ;;  %1219 = vmatmul.mubr.f32.vlgmr.msra.gmra.mrb[12].mxu1 %v1075_v21 }
 0x25b   :  { %2579 = vmatpush1.bf16.msra.mxu0 %v3366_v60  ;;  %2611 = vmatpush1.bf16.msra.mxu1 %v3565_v58 }
 0x25c   :  { %2581 = vmatprep.subr.bf16.mxu0 %v3374_v63  ;;  %2613 = vmatprep.subr.bf16.mxu1 %v3567_v59 }
 0x25d   :  { %1324 = vmatprep.mubr.f32.mxu0 %v3151_v3  ;;  %1395 = vmatprep.mubr.f32.mxu1 %v3151_v3 }
 0x25f   :  { %2583 = vmatpush1.bf16.msra.mxu0 %v3401_v8  ;;  %2615 = vmatpush1.bf16.msra.mxu1 %v3586_v2 }
 0x260   :  { %2585 = vmatprep.subr.bf16.mxu0 %v3404_v10  ;;  %2617 = vmatprep.subr.bf16.mxu1 %v3589_v4 }
 0x263   :  { %2587 = vmatpush1.bf16.msra.mxu0 %v3427_v16  ;;  %2619 = vmatpush1.bf16.msra.mxu1 %v3610_v9 }
 0x264   :  { %2589 = vmatprep.subr.bf16.mxu0 %v3430_v17  ;;  %2621 = vmatprep.subr.bf16.mxu1 %v3613_v11 }
 0x267   :  { %2591 = vmatpush1.bf16.msra.mxu0 %v3452_v24  ;;  %2623 = vmatpush1.bf16.msra.mxu1 %v3633_v18 }
 0x268   :  { %2593 = vmatprep.subr.bf16.mxu0 %v3455_v25  ;;  %2625 = vmatprep.subr.bf16.mxu1 %v3636_v19 }
 0x26b   :  { %2595 = vmatpush1.bf16.msra.mxu0 %v3476_v30  ;;  %2627 = vmatpush1.bf16.msra.mxu1 %v3656_v27 }
 0x26c   :  { %2597 = vmatprep.subr.bf16.mxu0 %v3479_v31  ;;  %2629 = vmatprep.subr.bf16.mxu1 %v3659_v28 }
 0x26f   :  { %2599 = vmatpush1.bf16.msra.mxu0 %v3500_v36  ;;  %2631 = vmatpush1.bf16.msra.mxu1 %v3679_v34 }
 0x270   :  { %2601 = vmatprep.subr.bf16.mxu0 %v3503_v37  ;;  %2633 = vmatprep.subr.bf16.mxu1 %v3682_v35 }
 0x273   :  { %2603 = vmatpush1.bf16.msra.mxu0 %v3524_v44  ;;  %2635 = vmatpush1.bf16.msra.mxu1 %v3702_v43 }
 0x274   :  { %2605 = vmatprep.subr.bf16.mxu0 %v3527_v45  ;;  %2637 = vmatprep.subr.bf16.mxu1 %v3705_v51 }
 0x277   :  { %2607 = vmatpush1.bf16.msra.mxu0 %v3542_v53  ;;  %2639 = vmatpush1.bf16.msra.mxu1 %v3719_v39 }
 0x278   :  { %2641 = vmatprep.subr.bf16.mxu0 %v3317_v48  ;;  %2673 = vmatprep.subr.bf16.mxu1 %v3412_v13 }
 0x32d   :  { %v1149_v26 = vpop.f32.mrb[4].mxu0  ;;  %v1220_v7 = vpop.f32.mrb[12].mxu1 }
 0x32e   :  { %v2928_v6 = vadd.f32 %v1149_v26, %v3770_v15  ;;  %v1151_v14 = vpop.f32.mrb[5].mxu0  ;;  %v1222_v20 = vpop.f32.mrb[13].mxu1  ;;  %v2952_v49 = vadd.f32 %v1220_v7, %v3774_v41 }
 0x32f   :  { %v2929_v22 = vadd.f32 %v1151_v14, %v3768_v38  ;;  %v2953_v29 = vadd.f32 %v1222_v20, %v3776_v42 }
 0x330   :  { %v2281_v46 = vmul.f32 -1.442695, %v2928_v6 }
 0x331   :  { %v2282_v12 = vmul.f32 -1.442695, %v2929_v22  ;;  %v2283_v32 = vmul.f32 -1.442695, %v2953_v29 }
 0x332   :  { %3055 = vpow2.f32 %v2281_v46 }
 0x333   :  { %3057 = vpow2.f32 %v2282_v12 }
 0x334   :  { %3059 = vpow2.f32 %v2283_v32 }
 0x335   :  { %3061 = vtanh.f32 %v2952_v49 }
 0x33c   :  { %v3056_v33 = vpop.eup %3055 }
 0x33d   :  { %v3058_v23 = vpop.eup %3057  ;;  %v1232_v52 = vadd.f32 1.0, %v3056_v33 }
 0x33e   :  { %v1238_v1 = vadd.f32 1.0, %v3058_v23  ;;  %v3060_v40 = vpop.eup %3059 }
 0x33f   :  { %3063 = vrcp.f32 %v1232_v52  ;;  %v3062_v5 = vpop.eup %3061  ;;  %v1245_v14 = vadd.f32 1.0, %v3060_v40 }
 0x340   :  { %3065 = vrcp.f32 %v1238_v1 }
 0x341   :  { %3067 = vrcp.f32 %v1245_v14 }
 0x349   :  { %v3064_v21 = vpop.eup %3063 }
 0x34a   :  { %v3066_v26 = vpop.eup %3065  ;;  %v1249_v6 = vmul.f32 %v3064_v21, %v3062_v5 }
 0x34b   :  { %v1248_v22 = vmul.f32 %v3066_v26, %v3822_v54  ;;  %v3068_v7 = vpop.eup %3067 }
 0x34d   :  { %v3864_v20 = vadd.f32 %v1249_v6, %v1248_v22 }
 0x34f   :  { %3069 = vtanh.f32 %v3864_v20 }
 0x359   :  { %v3070_v46 = vpop.eup %3069 }
 0x35a   :  { %v1252_v12 = vmul.f32 %v3070_v46, %v3068_v7 }
 0x35c   :  { %1325 = vmatmul.mubr.f32.vlgmr.msra.gmra.mrb[6].mxu0 %v1252_v12  ;;  %1396 = vmatmul.mubr.f32.vlgmr.msra.gmra.mrb[14].mxu1 %v1252_v12 }
 0x35d   :  { %2643 = vmatpush1.bf16.msra.mxu0 %v3366_v60  ;;  %2675 = vmatpush1.bf16.msra.mxu1 %v3565_v58 }
 0x35e   :  { %2645 = vmatprep.subr.bf16.mxu0 %v3374_v63  ;;  %2677 = vmatprep.subr.bf16.mxu1 %v3567_v59 }
 0x35f   :  { %1501 = vmatprep.mubr.f32.mxu0 %v3151_v3  ;;  %1572 = vmatprep.mubr.f32.mxu1 %v3151_v3 }
 0x361   :  { %2647 = vmatpush1.bf16.msra.mxu0 %v3401_v8  ;;  %2679 = vmatpush1.bf16.msra.mxu1 %v3586_v2 }
 0x362   :  { %2649 = vmatprep.subr.bf16.mxu0 %v3404_v10  ;;  %2681 = vmatprep.subr.bf16.mxu1 %v3589_v4 }
 0x365   :  { %2651 = vmatpush1.bf16.msra.mxu0 %v3427_v16  ;;  %2683 = vmatpush1.bf16.msra.mxu1 %v3610_v9 }
 0x366   :  { %2653 = vmatprep.subr.bf16.mxu0 %v3430_v17  ;;  %2685 = vmatprep.subr.bf16.mxu1 %v3613_v11 }
 0x369   :  { %2655 = vmatpush1.bf16.msra.mxu0 %v3452_v24  ;;  %2687 = vmatpush1.bf16.msra.mxu1 %v3633_v18 }
 0x36a   :  { %2657 = vmatprep.subr.bf16.mxu0 %v3455_v25  ;;  %2689 = vmatprep.subr.bf16.mxu1 %v3636_v19 }
 0x36d   :  { %2659 = vmatpush1.bf16.msra.mxu0 %v3476_v30  ;;  %2691 = vmatpush1.bf16.msra.mxu1 %v3656_v27 }
 0x36e   :  { %2661 = vmatprep.subr.bf16.mxu0 %v3479_v31  ;;  %2693 = vmatprep.subr.bf16.mxu1 %v3659_v28 }
 0x371   :  { %2663 = vmatpush1.bf16.msra.mxu0 %v3500_v36  ;;  %2695 = vmatpush1.bf16.msra.mxu1 %v3679_v34 }
 0x372   :  { %2665 = vmatprep.subr.bf16.mxu0 %v3503_v37  ;;  %2697 = vmatprep.subr.bf16.mxu1 %v3682_v35 }
 0x375   :  { %2667 = vmatpush1.bf16.msra.mxu0 %v3524_v44  ;;  %2699 = vmatpush1.bf16.msra.mxu1 %v3702_v43 }
 0x376   :  { %2669 = vmatprep.subr.bf16.mxu0 %v3527_v45  ;;  %2701 = vmatprep.subr.bf16.mxu1 %v3705_v51 }
 0x379   :  { %2671 = vmatpush1.bf16.msra.mxu0 %v3542_v53  ;;  %2703 = vmatpush1.bf16.msra.mxu1 %v3719_v39 }
 0x37a   :  { %2705 = vmatprep.subr.bf16.mxu0 %v3317_v48  ;;  %2737 = vmatprep.subr.bf16.mxu1 %v3412_v13 }
 0x42f   :  { %v1326_v54 = vpop.f32.mrb[6].mxu0  ;;  %v1397_v29 = vpop.f32.mrb[14].mxu1 }
 0x430   :  { %v2930_v32 = vadd.f32 %v1326_v54, %v3770_v15  ;;  %v1328_v49 = vpop.f32.mrb[7].mxu0  ;;  %v1399_v33 = vpop.f32.mrb[15].mxu1  ;;  %v2954_v21 = vadd.f32 %v1397_v29, %v3774_v41 }
 0x431   :  { %v2931_v23 = vadd.f32 %v1328_v49, %v3768_v38  ;;  %v2955_v40 = vadd.f32 %v1399_v33, %v3776_v42 }
 0x432   :  { %v2284_v52 = vmul.f32 -1.442695, %v2930_v32 }
 0x433   :  { %v2285_v1 = vmul.f32 -1.442695, %v2931_v23  ;;  %v2286_v5 = vmul.f32 -1.442695, %v2955_v40  ;;  %v2934_v40 = vadd.f32 %v3768_v38, %v3751_v50 }
 0x434   :  { %3071 = vpow2.f32 %v2284_v52 }
 0x435   :  { %3073 = vpow2.f32 %v2285_v1 }
 0x436   :  { %3075 = vpow2.f32 %v2286_v5 }
 0x437   :  { %3077 = vtanh.f32 %v2954_v21 }
 0x43e   :  { %v3072_v26 = vpop.eup %3071 }
 0x43f   :  { %v3074_v6 = vpop.eup %3073  ;;  %v1409_v14 = vadd.f32 1.0, %v3072_v26 }
 0x440   :  { %v1415_v22 = vadd.f32 1.0, %v3074_v6  ;;  %v3076_v7 = vpop.eup %3075 }
 0x441   :  { %3079 = vrcp.f32 %v1409_v14  ;;  %v3078_v46 = vpop.eup %3077  ;;  %v1422_v49 = vadd.f32 1.0, %v3076_v7 }
 0x442   :  { %3081 = vrcp.f32 %v1415_v22 }
 0x443   :  { %3083 = vrcp.f32 %v1422_v49 }
 0x44b   :  { %v3080_v12 = vpop.eup %3079 }
 0x44c   :  { %v3082_v54 = vpop.eup %3081  ;;  %v1426_v32 = vmul.f32 %v3080_v12, %v3078_v46 }
 0x44d   :  { %v1425_v23 = vmul.f32 %v3082_v54, %v3864_v20  ;;  %v3084_v29 = vpop.eup %3083  ;;  %v2932_v20 = vadd.f32 %v3770_v15, %v3749_v47 }
 0x44f   :  { %v3906_v33 = vadd.f32 %v1426_v32, %v1425_v23 }
 0x451   :  { %3085 = vtanh.f32 %v3906_v33 }
 0x45b   :  { %v3086_v52 = vpop.eup %3085 }
 0x45c   :  { %v1429_v1 = vmul.f32 %v3086_v52, %v3084_v29 }
 0x45e   :  { %1502 = vmatmul.mubr.f32.vlgmr.msra.gmra.mrb[14].mxu0 %v1429_v1  ;;  %1573 = vmatmul.mubr.f32.vlgmr.msra.gmra.mrb[16].mxu1 %v1429_v1 }
 0x45f   :  { %2707 = vmatpush1.bf16.msra.mxu0 %v3366_v60  ;;  %2739 = vmatpush1.bf16.msra.mxu1 %v3565_v58 }
 0x460   :  { %2709 = vmatprep.subr.bf16.mxu0 %v3374_v63  ;;  %2741 = vmatprep.subr.bf16.mxu1 %v3567_v59 }
 0x461   :  { %1678 = vmatprep.mubr.f32.mxu0 %v3151_v3  ;;  %1749 = vmatprep.mubr.f32.mxu1 %v3151_v3 }
 0x463   :  { %2711 = vmatpush1.bf16.msra.mxu0 %v3401_v8  ;;  %2743 = vmatpush1.bf16.msra.mxu1 %v3586_v2 }
 0x464   :  { %2713 = vmatprep.subr.bf16.mxu0 %v3404_v10  ;;  %2745 = vmatprep.subr.bf16.mxu1 %v3589_v4 }
 0x467   :  { %2715 = vmatpush1.bf16.msra.mxu0 %v3427_v16  ;;  %2747 = vmatpush1.bf16.msra.mxu1 %v3610_v9 }
 0x468   :  { %2717 = vmatprep.subr.bf16.mxu0 %v3430_v17  ;;  %2749 = vmatprep.subr.bf16.mxu1 %v3613_v11 }
 0x46b   :  { %2719 = vmatpush1.bf16.msra.mxu0 %v3452_v24  ;;  %2751 = vmatpush1.bf16.msra.mxu1 %v3633_v18 }
 0x46c   :  { %2721 = vmatprep.subr.bf16.mxu0 %v3455_v25  ;;  %2753 = vmatprep.subr.bf16.mxu1 %v3636_v19 }
 0x46f   :  { %2723 = vmatpush1.bf16.msra.mxu0 %v3476_v30  ;;  %2755 = vmatpush1.bf16.msra.mxu1 %v3656_v27 }
 0x470   :  { %2725 = vmatprep.subr.bf16.mxu0 %v3479_v31  ;;  %2757 = vmatprep.subr.bf16.mxu1 %v3659_v28 }
 0x473   :  { %2727 = vmatpush1.bf16.msra.mxu0 %v3500_v36  ;;  %2759 = vmatpush1.bf16.msra.mxu1 %v3679_v34 }
 0x474   :  { %2729 = vmatprep.subr.bf16.mxu0 %v3503_v37  ;;  %2761 = vmatprep.subr.bf16.mxu1 %v3682_v35 }
 0x477   :  { %2731 = vmatpush1.bf16.msra.mxu0 %v3524_v44  ;;  %2763 = vmatpush1.bf16.msra.mxu1 %v3702_v43 }
 0x478   :  { %2733 = vmatprep.subr.bf16.mxu0 %v3527_v45  ;;  %2765 = vmatprep.subr.bf16.mxu1 %v3705_v51 }
 0x47b   :  { %2735 = vmatpush1.bf16.msra.mxu0 %v3542_v53  ;;  %2767 = vmatpush1.bf16.msra.mxu1 %v3719_v39 }
 0x47c   :  { %2769 = vmatprep.subr.bf16.mxu0 %v3317_v48  ;;  %2801 = vmatprep.subr.bf16.mxu1 %v3412_v13 }
 0x531   :  { %v1503_v5 = vpop.f32.mrb[14].mxu0  ;;  %v1574_v21 = vpop.f32.mrb[16].mxu1 }
 0x532   :  { %v2933_v26 = vadd.f32 %v2932_v20, %v1503_v5  ;;  %v1505_v6 = vpop.f32.mrb[15].mxu0  ;;  %v1576_v14 = vpop.f32.mrb[17].mxu1  ;;  %v2956_v32 = vadd.f32 %v1574_v21, %v3774_v41 }
 0x533   :  { %v2935_v22 = vadd.f32 %v2934_v40, %v1505_v6  ;;  %v2957_v12 = vadd.f32 %v1576_v14, %v3776_v42 }
 0x534   :  { %v2287_v7 = vmul.f32 -1.442695, %v2933_v26 }
 0x535   :  { %v2288_v46 = vmul.f32 -1.442695, %v2935_v22  ;;  %v2289_v54 = vmul.f32 -1.442695, %v2957_v12 }
 0x536   :  { %3087 = vpow2.f32 %v2287_v7  ;;  %v2938_v7 = vadd.f32 %v3768_v38, %v3755_v56 }
 0x537   :  { %3089 = vpow2.f32 %v2288_v46 }
 0x538   :  { %3091 = vpow2.f32 %v2289_v54 }
 0x539   :  { %3093 = vtanh.f32 %v2956_v32 }
 0x540   :  { %v3088_v49 = vpop.eup %3087 }
 0x541   :  { %v3090_v47 = vpop.eup %3089  ;;  %v1586_v23 = vadd.f32 1.0, %v3088_v49 }
 0x542   :  { %v1592_v50 = vadd.f32 1.0, %v3090_v47  ;;  %v3092_v29 = vpop.eup %3091 }
 0x543   :  { %3095 = vrcp.f32 %v1586_v23  ;;  %v3094_v52 = vpop.eup %3093  ;;  %v1599_v5 = vadd.f32 1.0, %v3092_v29 }
 0x544   :  { %3097 = vrcp.f32 %v1592_v50 }
 0x545   :  { %3099 = vrcp.f32 %v1599_v5 }
 0x54d   :  { %v3096_v1 = vpop.eup %3095 }
 0x54e   :  { %v3098_v20 = vpop.eup %3097  ;;  %v1603_v40 = vmul.f32 %v3096_v1, %v3094_v52 }
 0x54f   :  { %v1602_v26 = vmul.f32 %v3098_v20, %v3906_v33  ;;  %v3100_v21 = vpop.eup %3099  ;;  %v2936_v33 = vadd.f32 %v3770_v15, %v3753_v55 }
 0x551   :  { %v3950_v6 = vadd.f32 %v1603_v40, %v1602_v26 }
 0x553   :  { %3101 = vtanh.f32 %v3950_v6 }
 0x55d   :  { %v3102_v14 = vpop.eup %3101 }
 0x55e   :  { %v1606_v22 = vmul.f32 %v3102_v14, %v3100_v21 }
 0x560   :  { %1679 = vmatmul.mubr.f32.vlgmr.msra.gmra.mrb[12].mxu0 %v1606_v22  ;;  %1750 = vmatmul.mubr.f32.vlgmr.msra.gmra.mrb[18].mxu1 %v1606_v22 }
 0x561   :  { %2771 = vmatpush1.bf16.msra.mxu0 %v3366_v60  ;;  %2803 = vmatpush1.bf16.msra.mxu1 %v3565_v58 }
 0x562   :  { %2773 = vmatprep.subr.bf16.mxu0 %v3374_v63  ;;  %2805 = vmatprep.subr.bf16.mxu1 %v3567_v59 }
 0x563   :  { %1855 = vmatprep.mubr.f32.mxu0 %v3151_v3  ;;  %1926 = vmatprep.mubr.f32.mxu1 %v3151_v3 }
 0x565   :  { %2775 = vmatpush1.bf16.msra.mxu0 %v3401_v8  ;;  %2807 = vmatpush1.bf16.msra.mxu1 %v3586_v2 }
 0x566   :  { %2777 = vmatprep.subr.bf16.mxu0 %v3404_v10  ;;  %2809 = vmatprep.subr.bf16.mxu1 %v3589_v4 }
 0x569   :  { %2779 = vmatpush1.bf16.msra.mxu0 %v3427_v16  ;;  %2811 = vmatpush1.bf16.msra.mxu1 %v3610_v9 }
 0x56a   :  { %2781 = vmatprep.subr.bf16.mxu0 %v3430_v17  ;;  %2813 = vmatprep.subr.bf16.mxu1 %v3613_v11 }
 0x56d   :  { %2783 = vmatpush1.bf16.msra.mxu0 %v3452_v24  ;;  %2815 = vmatpush1.bf16.msra.mxu1 %v3633_v18 }
 0x56e   :  { %2785 = vmatprep.subr.bf16.mxu0 %v3455_v25  ;;  %2817 = vmatprep.subr.bf16.mxu1 %v3636_v19 }
 0x571   :  { %2787 = vmatpush1.bf16.msra.mxu0 %v3476_v30  ;;  %2819 = vmatpush1.bf16.msra.mxu1 %v3656_v27 }
 0x572   :  { %2789 = vmatprep.subr.bf16.mxu0 %v3479_v31  ;;  %2821 = vmatprep.subr.bf16.mxu1 %v3659_v28 }
 0x575   :  { %2791 = vmatpush1.bf16.msra.mxu0 %v3500_v36  ;;  %2823 = vmatpush1.bf16.msra.mxu1 %v3679_v34 }
 0x576   :  { %2793 = vmatprep.subr.bf16.mxu0 %v3503_v37  ;;  %2825 = vmatprep.subr.bf16.mxu1 %v3682_v35 }
 0x579   :  { %2795 = vmatpush1.bf16.msra.mxu0 %v3524_v44  ;;  %2827 = vmatpush1.bf16.msra.mxu1 %v3702_v43 }
 0x57a   :  { %2797 = vmatprep.subr.bf16.mxu0 %v3527_v45  ;;  %2829 = vmatprep.subr.bf16.mxu1 %v3705_v51 }
 0x57d   :  { %2799 = vmatpush1.bf16.msra.mxu0 %v3542_v53  ;;  %2831 = vmatpush1.bf16.msra.mxu1 %v3719_v39 }
 0x57e   :  { %2833 = vmatprep.subr.bf16.mxu0 %v3317_v48  ;;  %2865 = vmatprep.subr.bf16.mxu1 %v3412_v13 }
 0x633   :  { %v1680_v46 = vpop.f32.mrb[12].mxu0  ;;  %v1751_v12 = vpop.f32.mrb[18].mxu1 }
 0x634   :  { %v2937_v54 = vadd.f32 %v2936_v33, %v1680_v46  ;;  %v1682_v32 = vpop.f32.mrb[13].mxu0  ;;  %v1753_v49 = vpop.f32.mrb[19].mxu1  ;;  %v2958_v13 = vadd.f32 %v1751_v12, %v3774_v41 }
 0x635   :  { %v2939_v47 = vadd.f32 %v2938_v7, %v1682_v32  ;;  %v2959_v48 = vadd.f32 %v1753_v49, %v3776_v42  ;;  %v2142_v49 = vld [vmem:[%s4105_s4 + $0x20] sm:$0xff] }
 0x636   :  { %v2290_v23 = vmul.f32 -1.442695, %v2937_v54  ;;  %v2141_v54 = vld [vmem:[%s4105_s4 + $0x18] sm:$0xff] }
 0x637   :  { %v2291_v50 = vmul.f32 -1.442695, %v2939_v47  ;;  %v2292_v29 = vmul.f32 -1.442695, %v2959_v48  ;;  %v2143_v47 = vld [vmem:[%s4105_s4 + $0x28] sm:$0xff]  ;;  %v2145_v48 = vld [vmem:[%s4105_s4 + $0x38] sm:$0xff] }
 0x638   :  { %3103 = vpow2.f32 %v2290_v23  ;;  %v2903_v23 = vpack.c.bf16 %v2143_v47, %v2142_v49 }
 0x639   :  { %3105 = vpow2.f32 %v2291_v50  ;;  %v2144_v50 = vld [vmem:[%s4105_s4 + $0x30] sm:$0xff] }
 0x63a   :  { %3107 = vpow2.f32 %v2292_v29  ;;  %v2906_v29 = vpack.c.bf16 %v2145_v48, %v2144_v50 }
 0x63b   :  { %3109 = vtanh.f32 %v2958_v13  ;;  %v2146_v13 = vld [vmem:[%s4105_s4 + $0x40] sm:$0xff] }
 0x642   :  { %v3104_v52 = vpop.eup %3103 }
 0x643   :  { %v3106_v55 = vpop.eup %3105  ;;  %v1763_v1 = vadd.f32 1.0, %v3104_v52  ;;  %v2147_v52 = vld [vmem:[%s4105_s4 + $0x48] sm:$0xff] }
 0x644   :  { %v1769_v56 = vadd.f32 1.0, %v3106_v55  ;;  %v3108_v20 = vpop.eup %3107  ;;  %v2909_v55 = vpack.c.bf16 %v2147_v52, %v2146_v13 }
 0x645   :  { %3111 = vrcp.f32 %v1763_v1  ;;  %v3110_v40 = vpop.eup %3109  ;;  %v1776_v14 = vadd.f32 1.0, %v3108_v20  ;;  %v2148_v1 = vld [vmem:[%s4105_s4 + $0x50] sm:$0xff]  ;;  %v2150_v20 = vld [vmem:[%s4105_s4 + $0x60] sm:$0xff] }
 0x646   :  { %3113 = vrcp.f32 %v1769_v56  ;;  %v2149_v56 = vld [vmem:[%s4105_s4 + $0x58] sm:$0xff] }
 0x647   :  { %3115 = vrcp.f32 %v1776_v14  ;;  %v2153_v14 = vld [vmem:[%s4105_s4 + $0x78] sm:$0xff] }
 0x64f   :  { %v3112_v5 = vpop.eup %3111 }
 0x650   :  { %v3114_v26 = vpop.eup %3113  ;;  %v1780_v21 = vmul.f32 %v3112_v5, %v3110_v40  ;;  %v2912_v40 = vpack.c.bf16 %v2149_v56, %v2148_v1  ;;  %v2151_v5 = vld [vmem:[%s4105_s4 + $0x68] sm:$0xff] }
 0x651   :  { %v1779_v22 = vmul.f32 %v3114_v26, %v3950_v6  ;;  %v3116_v7 = vpop.eup %3115  ;;  %v2140_v6 = vld [vmem:[%s4105_s4 + $0x10] sm:$0xff]  ;;  %v2915_v26 = vpack.c.bf16 %v2151_v5, %v2150_v20 }
 0x652   :  { %v2900_v32 = vpack.c.bf16 %v2141_v54, %v2140_v6 }
 0x653   :  { %v3994_v33 = vadd.f32 %v1780_v21, %v1779_v22  ;;  %v2152_v21 = vld [vmem:[%s4105_s4 + $0x70] sm:$0xff] }
 0x654   :  { %v2918_v22 = vpack.c.bf16 %v2153_v14, %v2152_v21 }
 0x655   :  { %3117 = vtanh.f32 %v3994_v33 }
 0x65f   :  { %v3118_v46 = vpop.eup %3117 }
 0x660   :  { %v1783_v12 = vmul.f32 %v3118_v46, %v3116_v7 }
 0x662   :  { %1856 = vmatmul.mubr.f32.vlgmr.msra.gmra.mrb[10].mxu0 %v1783_v12  ;;  %1927 = vmatmul.mubr.f32.vlgmr.msra.gmra.mrb[20].mxu1 %v1783_v12 }
 0x663   :  { %2835 = vmatpush1.bf16.msra.mxu0 %v3366_v60  ;;  %2867 = vmatpush1.bf16.msra.mxu1 %v3565_v58  ;;  %v2940_v60 = vadd.f32 %v3770_v15, %v3757_v57 }
 0x664   :  { %2837 = vmatprep.subr.bf16.mxu0 %v3374_v63  ;;  %2869 = vmatprep.subr.bf16.mxu1 %v3567_v59  ;;  %v2942_v63 = vadd.f32 %v3768_v38, %v3759_v61  ;;  %v3152_v61 = vmov 0.0|0.0  }
 0x665   :  { %2032 = vmatprep.mubr.f32.mxu0 %v3151_v3  ;;  %2103 = vmatprep.mubr.f32.mxu1 %v3151_v3 }
 0x667   :  { %2839 = vmatpush1.bf16.msra.mxu0 %v3401_v8  ;;  %2871 = vmatpush1.bf16.msra.mxu1 %v3586_v2 }
 0x668   :  { %2841 = vmatprep.subr.bf16.mxu0 %v3404_v10  ;;  %2873 = vmatprep.subr.bf16.mxu1 %v3589_v4 }
 0x66b   :  { %2843 = vmatpush1.bf16.msra.mxu0 %v3427_v16  ;;  %2875 = vmatpush1.bf16.msra.mxu1 %v3610_v9 }
 0x66c   :  { %2845 = vmatprep.subr.bf16.mxu0 %v3430_v17  ;;  %2877 = vmatprep.subr.bf16.mxu1 %v3613_v11 }
 0x66f   :  { %2847 = vmatpush1.bf16.msra.mxu0 %v3452_v24  ;;  %2879 = vmatpush1.bf16.msra.mxu1 %v3633_v18 }
 0x670   :  { %2849 = vmatprep.subr.bf16.mxu0 %v3455_v25  ;;  %2881 = vmatprep.subr.bf16.mxu1 %v3636_v19 }
 0x673   :  { %2851 = vmatpush1.bf16.msra.mxu0 %v3476_v30  ;;  %2883 = vmatpush1.bf16.msra.mxu1 %v3656_v27 }
 0x674   :  { %2853 = vmatprep.subr.bf16.mxu0 %v3479_v31  ;;  %2885 = vmatprep.subr.bf16.mxu1 %v3659_v28 }
 0x677   :  { %2855 = vmatpush1.bf16.msra.mxu0 %v3500_v36  ;;  %2887 = vmatpush1.bf16.msra.mxu1 %v3679_v34 }
 0x678   :  { %2857 = vmatprep.subr.bf16.mxu0 %v3503_v37  ;;  %2889 = vmatprep.subr.bf16.mxu1 %v3682_v35 }
 0x67b   :  { %2859 = vmatpush1.bf16.msra.mxu0 %v3524_v44  ;;  %2891 = vmatpush1.bf16.msra.mxu1 %v3702_v43 }
 0x67c   :  { %2861 = vmatprep.subr.bf16.mxu0 %v3527_v45  ;;  %2893 = vmatprep.subr.bf16.mxu1 %v3705_v51  ;;  %v2138_v51 = vld [vmem:[%s4105_s4] sm:$0xff] }
 0x67f   :  { %2863 = vmatpush1.bf16.msra.mxu0 %v3542_v53  ;;  %2895 = vmatpush1.bf16.msra.mxu1 %v3719_v39  ;;  %v2139_v39 = vld [vmem:[%s4105_s4 + $0x8] sm:$0xff] }
 0x680   :  { %v2897_v57 = vpack.c.bf16 %v2139_v39, %v2138_v51  ;;  %2896 = vmatprep.subr.bf16.mxu0 %v3152_v61 }
 0x735   :  { %v1857_v8 = vpop.f32.mrb[10].mxu0  ;;  %v1928_v10 = vpop.f32.mrb[20].mxu1 }
 0x736   :  { %v2941_v16 = vadd.f32 %v2940_v60, %v1857_v8  ;;  %v1859_v17 = vpop.f32.mrb[11].mxu0  ;;  %v1930_v24 = vpop.f32.mrb[21].mxu1  ;;  %v2960_v44 = vadd.f32 %v1928_v10, %v3774_v41 }
 0x737   :  { %v2943_v25 = vadd.f32 %v2942_v63, %v1859_v17  ;;  %v2961_v36 = vadd.f32 %v1930_v24, %v3776_v42 }
 0x738   :  { %v2293_v30 = vmul.f32 -1.442695, %v2941_v16 }
 0x739   :  { %v2294_v31 = vmul.f32 -1.442695, %v2943_v25  ;;  %v2295_v37 = vmul.f32 -1.442695, %v2961_v36 }
 0x73a   :  { %3119 = vpow2.f32 %v2293_v30 }
 0x73b   :  { %3121 = vpow2.f32 %v2294_v31 }
 0x73c   :  { %3123 = vpow2.f32 %v2295_v37 }
 0x73d   :  { %3125 = vtanh.f32 %v2960_v44 }
 0x744   :  { %v3120_v45 = vpop.eup %3119 }
 0x745   :  { %v3122_v53 = vpop.eup %3121  ;;  %v1940_v58 = vadd.f32 1.0, %v3120_v45 }
 0x746   :  { %v1946_v59 = vadd.f32 1.0, %v3122_v53  ;;  %v3124_v2 = vpop.eup %3123 }
 0x747   :  { %3127 = vrcp.f32 %v1940_v58  ;;  %v3126_v4 = vpop.eup %3125  ;;  %v1953_v19 = vadd.f32 1.0, %v3124_v2  ;;  %v2299_v2 = vld [vmem:[%s4106_s5] ss:$0 sm:$0xff] }
 0x748   :  { %3129 = vrcp.f32 %v1946_v59 }
 0x749   :  { %3131 = vrcp.f32 %v1953_v19 }
 0x751   :  { %v3128_v9 = vpop.eup %3127 }
 0x752   :  { %v3130_v11 = vpop.eup %3129  ;;  %v1957_v18 = vmul.f32 %v3128_v9, %v3126_v4 }
 0x753   :  { %v1956_v27 = vmul.f32 %v3130_v11, %v3994_v33  ;;  %v3132_v34 = vpop.eup %3131  ;;  %v2944_v33 = vadd.f32 %v3770_v15, %v3761_v62 }
 0x755   :  { %v4036_v28 = vadd.f32 %v1957_v18, %v1956_v27 }
 0x757   :  { %3133 = vtanh.f32 %v4036_v28 }
 0x761   :  { %v3134_v35 = vpop.eup %3133 }
 0x762   :  { %v1960_v43 = vmul.f32 %v3134_v35, %v3132_v34 }
 0x764   :  { %2033 = vmatmul.mubr.f32.vlgmr.msra.gmra.mrb[8].mxu0 %v1960_v43  ;;  %2104 = vmatmul.mubr.f32.vlgmr.msra.gmra.mrb[22].mxu1 %v1960_v43 }
 0x765   :  { %2898 = vmatpush3.bf16.msra.mxu0 %v2897_v57  ;;  %2349 = vmatprep.mubr.msk.f32.mxu0 %vm3153_vm1, %v3151_v3  ;;  %v2946_v3 = vadd.f32 %v3768_v38, %v3763_v0 }
 0x766   :  { %2899 = vmatprep.subr.bf16.mxu0 %v3152_v61 }
 0x769   :  { %2901 = vmatpush3.bf16.msra.mxu0 %v2900_v32 }
 0x76a   :  { %2902 = vmatprep.subr.bf16.mxu0 %v3152_v61 }
 0x76d   :  { %2904 = vmatpush3.bf16.msra.mxu0 %v2903_v23 }
 0x76e   :  { %2905 = vmatprep.subr.bf16.mxu0 %v3152_v61 }
 0x771   :  { %2907 = vmatpush3.bf16.msra.mxu0 %v2906_v29 }
 0x772   :  { %2908 = vmatprep.subr.bf16.mxu0 %v3152_v61 }
 0x775   :  { %2910 = vmatpush3.bf16.msra.mxu0 %v2909_v55 }
 0x776   :  { %2911 = vmatprep.subr.bf16.mxu0 %v3152_v61 }
 0x779   :  { %2913 = vmatpush3.bf16.msra.mxu0 %v2912_v40 }
 0x77a   :  { %2914 = vmatprep.subr.bf16.mxu0 %v3152_v61 }
 0x77d   :  { %2916 = vmatpush3.bf16.msra.mxu0 %v2915_v26 }
 0x77e   :  { %2917 = vmatprep.subr.bf16.mxu0 %v3152_v61 }
 0x781   :  { %2919 = vmatpush3.bf16.msra.mxu0 %v2918_v22 }
 0x837   :  { %v2034_v7 = vpop.f32.mrb[8].mxu0  ;;  %v2105_v46 = vpop.f32.mrb[22].mxu1 }
 0x838   :  { %v2945_v12 = vadd.f32 %v2944_v33, %v2034_v7  ;;  %v2036_v60 = vpop.f32.mrb[9].mxu0  ;;  %v2107_v63 = vpop.f32.mrb[23].mxu1  ;;  %v2962_v25 = vadd.f32 %v2105_v46, %v3774_v41 }
 0x839   :  { %v2947_v8 = vadd.f32 %v2946_v3, %v2036_v60  ;;  %v2963_v17 = vadd.f32 %v2107_v63, %v3776_v42 }
 0x83a   :  { %v2296_v10 = vmul.f32 -1.442695, %v2945_v12 }
 0x83b   :  { %v2297_v16 = vmul.f32 -1.442695, %v2947_v8  ;;  %v2298_v24 = vmul.f32 -1.442695, %v2963_v17 }
 0x83c   :  { %3135 = vpow2.f32 %v2296_v10 }
 0x83d   :  { %3137 = vpow2.f32 %v2297_v16 }
 0x83e   :  { %3139 = vpow2.f32 %v2298_v24 }
 0x83f   :  { %3141 = vtanh.f32 %v2962_v25 }
 0x846   :  { %v3136_v30 = vpop.eup %3135 }
 0x847   :  { %v3138_v62 = vpop.eup %3137  ;;  %v2117_v15 = vadd.f32 1.0, %v3136_v30 }
 0x848   :  { %v2123_v0 = vadd.f32 1.0, %v3138_v62  ;;  %v3140_v38 = vpop.eup %3139 }
 0x849   :  { %3143 = vrcp.f32 %v2117_v15  ;;  %v3142_v31 = vpop.eup %3141  ;;  %v2130_v45 = vadd.f32 1.0, %v3140_v38 }
 0x84a   :  { %3145 = vrcp.f32 %v2123_v0 }
 0x84b   :  { %3147 = vrcp.f32 %v2130_v45 }
 0x853   :  { %v3144_v36 = vpop.eup %3143 }
 0x854   :  { %v3146_v37 = vpop.eup %3145  ;;  %v2134_v44 = vmul.f32 %v3144_v36, %v3142_v31 }
 0x855   :  { %v2133_v53 = vmul.f32 %v3146_v37, %v4036_v28  ;;  %v3148_v41 = vpop.eup %3147 }
 0x857   :  { %v2135_v42 = vadd.f32 %v2134_v44, %v2133_v53 }
 0x859   :  { %3149 = vtanh.f32 %v2135_v42 }
 0x863   :  { %v3150_v58 = vpop.eup %3149 }
 0x864   :  { %v2137_v59 = vmul.f32 %v3150_v58, %v3148_v41 }
 0x866   :  { %2350 = vmatmul.mubr.f32.vlgmr.msra.gmra.mrb[16].mxu0 %v2137_v59 }
 0x939   :  { %v2227_v4 = vpop.f32.mrb[16].mxu0 }
 0x93a   :  { %v2228_v9 = vadd.f32 %v2299_v2, %v2227_v4  ;;  %v2351_v11 = vpop.f32.mrb[17].mxu0 }
 0x93c   :  { %2231 = vst [vmem:[%s4107_s6] sm:$0xff] %v2228_v9 }

</bundles_post_ra>
